<compile_context>
chip_gen: v7x
topology: tpu7x:2x2x1
jax: 0.10.0
libtpu: 0.0.40
codegen_flags: <defaults>
</compile_context>

<pallas_src>
import functools

import jax
import jax.numpy as jnp
from jax import lax
from jax.experimental import pallas as pl
from jax.experimental.pallas import tpu as pltpu


def _round_up(a, b):
    return ((a + b - 1) // b) * b


def _vmem_physical_bytes():
    """Physical VMEM of the local chip; conservative 64 MiB fallback (v7x per-TC)."""
    try:
        info = pltpu.get_tpu_info()
        for attr in ("vmem_capacity_bytes", "vmem_size_bytes", "vmem_bytes"):
            v = getattr(info, attr, None)
            if v:
                return int(v)
    except Exception:
        pass
    return 64 * 1024 * 1024


def _lstm_encoder_kernel(embed_ref, wih_hbm, whh_hbm, bias_ref, h0_ref, c0_ref,
                         out_ref, hn_ref, cn_ref,
                         xproj_ref, h_state, c_state, wih_vmem, whh_vmem, dma_sem,
                         *, seq_len, unroll, bf16_gates):
    """One sequence chunk of the single-layer LSTM recurrence (batch = 1).

    embed_ref : (T, Hp)    bf16  embedded (dropout'd) inputs for this chunk
    wih_hbm   : (Hp, 4Hp)  bf16  W_ih^T in HBM (gate blocks i,f,g,o padded to Hp lanes)
    whh_hbm   : (Hp, 4Hp)  bf16  W_hh^T in HBM (same layout)
    bias_ref  : (1, 4Hp)   f32   b_ih + b_hh (padded lanes zero)
    h0_ref    : (1, Hp)    f32   initial hidden state (padded lanes zero)
    c0_ref    : (1, Hp)    f32   initial cell state (padded lanes zero)
    out_ref   : (T, Hp)    f32   per-timestep hidden states for this chunk
    hn_ref    : (1, Hp)    f32   final hidden state (snapshotted at step seq_len-1)
    cn_ref    : (1, Hp)    f32   final cell state
    xproj_ref : (T, 4Hp)   f32   scratch: x @ W_ih^T + b for this chunk
    h_state   : (1, Hp)    bf16/f32 scratch: hidden state carried across chunks
    c_state   : (1, Hp)    f32   scratch: cell state carried across chunks
    wih_vmem  : (Hp, 4Hp)  bf16  scratch: single-buffered resident W_ih^T
    whh_vmem  : (Hp, 4Hp)  bf16  scratch: single-buffered resident W_hh^T
    dma_sem   : DMA((2,))        semaphores for the one-time weight DMAs
    """
    T = out_ref.shape[0]
    Hp = out_ref.shape[1]
    chunk = pl.program_id(0)

    @pl.when(chunk == 0)
    def _():
        # Single-buffered resident weights: one HBM->VMEM DMA, reused by every chunk.
        cp_ih = pltpu.make_async_copy(wih_hbm, wih_vmem, dma_sem.at[0])
        cp_hh = pltpu.make_async_copy(whh_hbm, whh_vmem, dma_sem.at[1])
        cp_ih.start()
        cp_hh.start()
        cp_ih.wait()
        cp_hh.wait()
        h_state[...] = h0_ref[...].astype(h_state.dtype)
        c_state[...] = c0_ref[...]
        # Initialize the (VMEM-resident) final-state blocks so they are never garbage.
        hn_ref[...] = h0_ref[...]
        cn_ref[...] = c0_ref[...]

    # Whole-chunk input projection on the MXU (bf16 x bf16, f32 accumulation).
    xproj_ref[...] = (
        jnp.dot(embed_ref[...], wih_vmem[...], preferred_element_type=jnp.float32)
        + bias_ref[...]
    )

    chunk_base = chunk * T

    def sub_body(s, carry):
        h, c = carry                      # h: (1,Hp) bf16 or f32 ; c: (1,Hp) f32
        base = pl.multiple_of(s * unroll, unroll)
        for k in range(unroll):           # unroll: scheduler window for EUP/VPU/MXU overlap
            t = base + k
            h_mat = h if bf16_gates else h.astype(jnp.bfloat16)
            # W_hh^T indexed directly from VMEM inside the dot (no vreg-resident hoist).
            gates = xproj_ref[pl.ds(t, 1), :] + jnp.dot(
                h_mat, whh_vmem[...], preferred_element_type=jnp.float32)
            if bf16_gates:
                # bf16 VPU/EUP path (v6e / v7x): gates + carried h in bf16, c stays f32.
                g16 = gates.astype(jnp.bfloat16)
                i_g = jax.nn.sigmoid(g16[:, 0:Hp])
                f_g = jax.nn.sigmoid(g16[:, Hp:2 * Hp])
                g_g = jnp.tanh(g16[:, 2 * Hp:3 * Hp])
                o_g = jax.nn.sigmoid(g16[:, 3 * Hp:4 * Hp])
                c = f_g * c + i_g * g_g                        # promotes to f32
                h = o_g * jnp.tanh(c.astype(jnp.bfloat16))     # bf16 hidden carry
                out_ref[pl.ds(t, 1), :] = h.astype(jnp.float32)
            else:
                # f32 path (v5e-safe: no bf16 VPU/EUP).
                i_g = jax.nn.sigmoid(gates[:, 0:Hp])
                f_g = jax.nn.sigmoid(gates[:, Hp:2 * Hp])
                g_g = jnp.tanh(gates[:, 2 * Hp:3 * Hp])
                o_g = jax.nn.sigmoid(gates[:, 3 * Hp:4 * Hp])
                c = f_g * c + i_g * g_g
                h = o_g * jnp.tanh(c)
                out_ref[pl.ds(t, 1), :] = h

            # Final-state snapshot at the last *valid* timestep; padded steps past it
            # may keep advancing h/c (only possible in the last chunk) — their outputs
            # are sliced away outside and hn/cn are already captured here.
            h_cur, c_cur = h, c

            @pl.when(chunk_base + t == seq_len - 1)
            def _():
                hn_ref[...] = h_cur.astype(jnp.float32)
                cn_ref[...] = c_cur

        return h, c

    h, c = lax.fori_loop(0, T // unroll, sub_body, (h_state[...], c_state[...]))
    h_state[...] = h
    c_state[...] = c


class EncoderLSTMPallas:
    """JAX/Pallas port of the PyTorch EncoderLSTM (inference / eval semantics)."""

    LANE = 128        # vreg lane width
    UNROLL = 8        # recurrence unroll factor (== f32 sublane count)
    MAX_CHUNK = 256   # max sequence tile per grid step

    def __init__(self, input_dim: int, hidden_size: int, key):
        self.hidden_size = hidden_size
        H = hidden_size
        Hp = max(self.LANE, _round_up(H, self.LANE))
        self._Hp = Hp

        k_emb, k_wih, k_whh, k_bih, k_bhh, k_h0, k_c0 = jax.random.split(key, 7)
        # nn.Embedding(input_dim, H): weight ~ N(0, 1)
        self.embedding = jax.random.normal(k_emb, (input_dim, H), jnp.float32)
        # nn.LSTM(H, H): weights uniform(-1/sqrt(H), 1/sqrt(H)), gate order i, f, g, o
        bound = 1.0 / (H ** 0.5)
        self.w_ih = jax.random.uniform(k_wih, (4 * H, H), jnp.float32, -bound, bound)
        self.w_hh = jax.random.uniform(k_whh, (4 * H, H), jnp.float32, -bound, bound)
        self.b_ih = jax.random.uniform(k_bih, (4 * H,), jnp.float32, -bound, bound)
        self.b_hh = jax.random.uniform(k_bhh, (4 * H,), jnp.float32, -bound, bound)
        # self.hidden = (randn(1,1,H), randn(1,1,H))
        self.h0 = jax.random.normal(k_h0, (1, 1, H), jnp.float32)
        self.c0 = jax.random.normal(k_c0, (1, 1, H), jnp.float32)

        # ---- kernel-side parameters: gate blocks padded to Hp lanes, bf16 weights ----
        wih_p = jnp.zeros((Hp, 4 * Hp), jnp.float32)
        whh_p = jnp.zeros((Hp, 4 * Hp), jnp.float32)
        bias_p = jnp.zeros((1, 4 * Hp), jnp.float32)
        for g in range(4):
            wih_p = wih_p.at[:H, g * Hp:g * Hp + H].set(self.w_ih[g * H:(g + 1) * H, :].T)
            whh_p = whh_p.at[:H, g * Hp:g * Hp + H].set(self.w_hh[g * H:(g + 1) * H, :].T)
            bias_p = bias_p.at[0, g * Hp:g * Hp + H].set(
                self.b_ih[g * H:(g + 1) * H] + self.b_hh[g * H:(g + 1) * H])
        self._wih = wih_p.astype(jnp.bfloat16)
        self._whh = whh_p.astype(jnp.bfloat16)
        self._bias = bias_p
        self._h0 = jnp.zeros((1, Hp), jnp.float32).at[:, :H].set(self.h0.reshape(1, H))
        self._c0 = jnp.zeros((1, Hp), jnp.float32).at[:, :H].set(self.c0.reshape(1, H))
        emb_p = jnp.zeros((input_dim, Hp), jnp.float32).at[:, :H].set(self.embedding)
        self._emb = emb_p.astype(jnp.bfloat16)

        # bf16 gates / bf16 hidden carry only where the chip has a bf16 VPU + EUP.
        kind = ""
        try:
            kind = jax.devices()[0].device_kind.lower()
        except Exception:
            pass
        self._bf16_gates = any(tag in kind for tag in ("v6", "v7", "7x"))

    def __call__(self, x):
        """x: (S,) int32 token indices. Returns (outputs (S,H), (h_n, c_n) each (1,1,H))."""
        H, Hp = self.hidden_size, self._Hp
        S = int(x.shape[0])

        # Glue: embedding gather (lanes already padded to Hp, bf16). Dropout: eval identity.
        # TODO(synk): training-mode dropout (p=0.2) would need pltpu.prng_* masking.
        embed = self._emb[x]                                   # (S, Hp) bf16

        T = min(self.MAX_CHUNK, _round_up(S, self.UNROLL))     # chunk length (multiple of 8)
        S_pad = _round_up(S, T)
        if S_pad != S:
            embed = jnp.pad(embed, ((0, S_pad - S), (0, 0)))
        n_chunks = S_pad // T

        kernel = functools.partial(
            _lstm_encoder_kernel, seq_len=S, unroll=self.UNROLL,
            bf16_gates=self._bf16_gates)

        # Resident-set estimate: weights are single-buffered VMEM scratch now.
        bf16, f32 = 2, 4
        resident = (
            2 * T * Hp * bf16                 # embed block (double-buffered)
            + 2 * Hp * 4 * Hp * bf16          # W_ih^T + W_hh^T (single-buffered scratch)
            + 2 * 4 * Hp * f32                # bias (double-buffered, tiny)
            + 2 * 2 * Hp * f32                # h0, c0
            + 2 * T * Hp * f32                # out block (double-buffered)
            + 2 * 2 * Hp * f32                # hn, cn
            + T * 4 * Hp * f32                # xproj scratch
            + 2 * Hp * f32                    # h/c carry scratch
        )
        phys = _vmem_physical_bytes()
        # ~80% of physical VMEM, capped at 100 MiB: ~51 MiB on v7x (64 MiB/TC),
        # up to 100 MiB on v5e/v6e (128 MiB) so large Hp/T don't force smaller chunks.
        cap = min(100 * 1024 * 1024, (phys * 4) // 5)
        vmem_limit = int(min(cap, max(16 * 1024 * 1024, 2 * resident)))

        out_p, h_n, c_n = pl.pallas_call(
            kernel,
            out_shape=(
                jax.ShapeDtypeStruct((S_pad, Hp), jnp.float32),
                jax.ShapeDtypeStruct((1, Hp), jnp.float32),
                jax.ShapeDtypeStruct((1, Hp), jnp.float32),
            ),
            grid_spec=pltpu.PrefetchScalarGridSpec(
                num_scalar_prefetch=0,
                grid=(n_chunks,),
                in_specs=[
                    pl.BlockSpec((T, Hp), lambda i: (i, 0)),          # embed chunk
                    pl.BlockSpec(memory_space=pl.ANY),                # W_ih^T (HBM, DMA once)
                    pl.BlockSpec(memory_space=pl.ANY),                # W_hh^T (HBM, DMA once)
                    pl.BlockSpec((1, 4 * Hp), lambda i: (0, 0)),      # bias
                    pl.BlockSpec((1, Hp), lambda i: (0, 0)),          # h0
                    pl.BlockSpec((1, Hp), lambda i: (0, 0)),          # c0
                ],
                out_specs=(
                    pl.BlockSpec((T, Hp), lambda i: (i, 0)),          # outputs chunk
                    pl.BlockSpec((1, Hp), lambda i: (0, 0)),          # h_n
                    pl.BlockSpec((1, Hp), lambda i: (0, 0)),          # c_n
                ),
                scratch_shapes=[
                    pltpu.VMEM((T, 4 * Hp), jnp.float32),             # xproj for the chunk
                    pltpu.VMEM((1, Hp),
                               jnp.bfloat16 if self._bf16_gates else jnp.float32),  # carried h
                    pltpu.VMEM((1, Hp), jnp.float32),                 # carried c
                    pltpu.VMEM((Hp, 4 * Hp), jnp.bfloat16),           # resident W_ih^T
                    pltpu.VMEM((Hp, 4 * Hp), jnp.bfloat16),           # resident W_hh^T
                    pltpu.SemaphoreType.DMA((2,)),                    # weight DMA sems
                ],
            ),
            compiler_params=pltpu.CompilerParams(
                dimension_semantics=("arbitrary",),   # serial recurrence across chunks
                vmem_limit_bytes=vmem_limit,
            ),
        )(embed, self._wih, self._whh, self._bias, self._h0, self._c0)

        outputs = out_p[:S, :H]
        return outputs, (h_n[:, :H].reshape(1, 1, H), c_n[:, :H].reshape(1, 1, H))


def _reference_lstm(model: EncoderLSTMPallas, x):
    """Pure-JAX f32 reference of the same forward pass (sanity check)."""
    H = model.hidden_size
    embed = model.embedding[x]
    h = model.h0.reshape(1, H)
    c = model.c0.reshape(1, H)
    outs = []
    for t in range(x.shape[0]):
        gates = embed[t:t + 1] @ model.w_ih.T + model.b_ih + h @ model.w_hh.T + model.b_hh
        i = jax.nn.sigmoid(gates[:, 0:H])
        f = jax.nn.sigmoid(gates[:, H:2 * H])
        g = jnp.tanh(gates[:, 2 * H:3 * H])
        o = jax.nn.sigmoid(gates[:, 3 * H:4 * H])
        c = f * c + i * g
        h = o * jnp.tanh(c)
        outs.append(h)
    return jnp.concatenate(outs, axis=0), h.reshape(1, 1, H), c.reshape(1, 1, H)


if __name__ == "__main__":
    key = jax.random.PRNGKey(0)
    k_params, k_x = jax.random.split(key)

    input_dim = 16      # vocab size
    hidden_size = 32
    seq_len = 8

    model = EncoderLSTMPallas(input_dim, hidden_size, k_params)
    x = jax.random.randint(k_x, (seq_len,), 0, input_dim, dtype=jnp.int32)

    outputs, (h_n, c_n) = model(x)
    jax.block_until_ready((outputs, h_n, c_n))

    ref_out, ref_h, ref_c = _reference_lstm(model, x)
    assert outputs.shape == (seq_len, hidden_size)
    assert h_n.shape == (1, 1, hidden_size) and c_n.shape == (1, 1, hidden_size)
    # bf16 weights (and bf16 gates on v6e/v7x) in the kernel vs. f32 reference.
    assert jnp.allclose(outputs, ref_out, atol=3e-2, rtol=3e-2)
    assert jnp.allclose(h_n, ref_h, atol=3e-2, rtol=3e-2)
    assert jnp.allclose(c_n, ref_c, atol=3e-2, rtol=3e-2)

    print("KERNEL_OK")
</pallas_src>

<mosaic_0001>
module attributes {stable_mosaic.version = 11 : i64} {
  func.func @_lstm_encoder_kernel(%arg0: i32, %arg1: memref<8x128xbf16, #tpu.memory_space<vmem>>, %arg2: memref<128x512xbf16, #tpu.memory_space<any>>, %arg3: memref<128x512xbf16, #tpu.memory_space<any>>, %arg4: memref<1x512xf32, #tpu.memory_space<vmem>>, %arg5: memref<1x128xf32, #tpu.memory_space<vmem>>, %arg6: memref<1x128xf32, #tpu.memory_space<vmem>>, %arg7: memref<8x128xf32, #tpu.memory_space<vmem>>, %arg8: memref<1x128xf32, #tpu.memory_space<vmem>>, %arg9: memref<1x128xf32, #tpu.memory_space<vmem>>, %arg10: memref<8x512xf32, #tpu.memory_space<vmem>>, %arg11: memref<1x128xf32, #tpu.memory_space<vmem>>, %arg12: memref<1x128xf32, #tpu.memory_space<vmem>>, %arg13: memref<128x512xbf16, #tpu.memory_space<vmem>>, %arg14: memref<128x512xbf16, #tpu.memory_space<vmem>>, %arg15: memref<2x!tpu.dma_semaphore, #tpu.memory_space<semaphore_mem>>) attributes {dimension_semantics = [#tpu.dimension_semantics<arbitrary>], iteration_bounds = array<i64: 1>, scalar_prefetch = 0 : i64, scratch_operands = 6 : i64, tpu.core_type = #tpu.core_type<tc>, window_params = [{transform_indices = @transform_0, window_bounds = array<i64: 8, 128>}, {}, {}, {pipeline_mode = #tpu.pipeline_mode<synchronous>, transform_indices = @transform_3, window_bounds = array<i64: 1, 512>}, {pipeline_mode = #tpu.pipeline_mode<synchronous>, transform_indices = @transform_4, window_bounds = array<i64: 1, 128>}, {pipeline_mode = #tpu.pipeline_mode<synchronous>, transform_indices = @transform_5, window_bounds = array<i64: 1, 128>}, {transform_indices = @transform_6, window_bounds = array<i64: 8, 128>}, {pipeline_mode = #tpu.pipeline_mode<synchronous>, transform_indices = @transform_7, window_bounds = array<i64: 1, 128>}, {pipeline_mode = #tpu.pipeline_mode<synchronous>, transform_indices = @transform_8, window_bounds = array<i64: 1, 128>}]} {
    %c0_i32 = arith.constant 0 : i32
    %0 = arith.cmpi eq, %arg0, %c0_i32 : i32
    %1 = arith.extui %0 : i1 to i32
    %c0_i32_0 = arith.constant 0 : i32
    %2 = arith.cmpi ne, %1, %c0_i32_0 : i32
    scf.if %2 {
      %c0_i32_100 = arith.constant 0 : i32
      %321 = tpu.memref_slice %arg15[%c0_i32_100] : memref<2x!tpu.dma_semaphore, #tpu.memory_space<semaphore_mem>> -> memref<1x!tpu.dma_semaphore, #tpu.memory_space<semaphore_mem>>
      %322 = tpu.memref_squeeze %321 : memref<1x!tpu.dma_semaphore, #tpu.memory_space<semaphore_mem>> -> memref<!tpu.dma_semaphore, #tpu.memory_space<semaphore_mem>>
      tpu.enqueue_dma source(%arg2 : memref<128x512xbf16, #tpu.memory_space<any>>) target(%arg13 : memref<128x512xbf16, #tpu.memory_space<vmem>>) target_semaphore(%322 : memref<!tpu.dma_semaphore, #tpu.memory_space<semaphore_mem>>)
      %c1_i32_101 = arith.constant 1 : i32
      %323 = tpu.memref_slice %arg15[%c1_i32_101] : memref<2x!tpu.dma_semaphore, #tpu.memory_space<semaphore_mem>> -> memref<1x!tpu.dma_semaphore, #tpu.memory_space<semaphore_mem>>
      %324 = tpu.memref_squeeze %323 : memref<1x!tpu.dma_semaphore, #tpu.memory_space<semaphore_mem>> -> memref<!tpu.dma_semaphore, #tpu.memory_space<semaphore_mem>>
      tpu.enqueue_dma source(%arg3 : memref<128x512xbf16, #tpu.memory_space<any>>) target(%arg14 : memref<128x512xbf16, #tpu.memory_space<vmem>>) target_semaphore(%324 : memref<!tpu.dma_semaphore, #tpu.memory_space<semaphore_mem>>)
      %c0_i32_102 = arith.constant 0 : i32
      %325 = tpu.memref_slice %arg15[%c0_i32_102] : memref<2x!tpu.dma_semaphore, #tpu.memory_space<semaphore_mem>> -> memref<1x!tpu.dma_semaphore, #tpu.memory_space<semaphore_mem>>
      %326 = tpu.memref_squeeze %325 : memref<1x!tpu.dma_semaphore, #tpu.memory_space<semaphore_mem>> -> memref<!tpu.dma_semaphore, #tpu.memory_space<semaphore_mem>>
      tpu.wait_dma2 semaphore(%326 : memref<!tpu.dma_semaphore, #tpu.memory_space<semaphore_mem>>) src(%arg2 : memref<128x512xbf16, #tpu.memory_space<any>>) dst(%arg13 : memref<128x512xbf16, #tpu.memory_space<vmem>>)
      %c1_i32_103 = arith.constant 1 : i32
      %327 = tpu.memref_slice %arg15[%c1_i32_103] : memref<2x!tpu.dma_semaphore, #tpu.memory_space<semaphore_mem>> -> memref<1x!tpu.dma_semaphore, #tpu.memory_space<semaphore_mem>>
      %328 = tpu.memref_squeeze %327 : memref<1x!tpu.dma_semaphore, #tpu.memory_space<semaphore_mem>> -> memref<!tpu.dma_semaphore, #tpu.memory_space<semaphore_mem>>
      tpu.wait_dma2 semaphore(%328 : memref<!tpu.dma_semaphore, #tpu.memory_space<semaphore_mem>>) src(%arg3 : memref<128x512xbf16, #tpu.memory_space<any>>) dst(%arg14 : memref<128x512xbf16, #tpu.memory_space<vmem>>)
      %c0_104 = arith.constant 0 : index
      %c0_105 = arith.constant 0 : index
      %329 = vector.load %arg5[%c0_104, %c0_105] : memref<1x128xf32, #tpu.memory_space<vmem>>, vector<1x128xf32>
      %c0_106 = arith.constant 0 : index
      %c0_107 = arith.constant 0 : index
      %330 = vector.load %arg11[%c0_106, %c0_107] : memref<1x128xf32, #tpu.memory_space<vmem>>, vector<1x128xf32>
      tpu.vector_store %arg11[%c0_106, %c0_107], %329 {strides = array<i32>} : memref<1x128xf32, #tpu.memory_space<vmem>>, vector<1x128xf32>,
      %c0_108 = arith.constant 0 : index
      %c0_109 = arith.constant 0 : index
      %331 = vector.load %arg6[%c0_108, %c0_109] : memref<1x128xf32, #tpu.memory_space<vmem>>, vector<1x128xf32>
      %c0_110 = arith.constant 0 : index
      %c0_111 = arith.constant 0 : index
      %332 = vector.load %arg12[%c0_110, %c0_111] : memref<1x128xf32, #tpu.memory_space<vmem>>, vector<1x128xf32>
      tpu.vector_store %arg12[%c0_110, %c0_111], %331 {strides = array<i32>} : memref<1x128xf32, #tpu.memory_space<vmem>>, vector<1x128xf32>,
      %c0_112 = arith.constant 0 : index
      %c0_113 = arith.constant 0 : index
      %333 = vector.load %arg5[%c0_112, %c0_113] : memref<1x128xf32, #tpu.memory_space<vmem>>, vector<1x128xf32>
      %c0_114 = arith.constant 0 : index
      %c0_115 = arith.constant 0 : index
      %334 = vector.load %arg8[%c0_114, %c0_115] : memref<1x128xf32, #tpu.memory_space<vmem>>, vector<1x128xf32>
      tpu.vector_store %arg8[%c0_114, %c0_115], %333 {strides = array<i32>} : memref<1x128xf32, #tpu.memory_space<vmem>>, vector<1x128xf32>,
      %c0_116 = arith.constant 0 : index
      %c0_117 = arith.constant 0 : index
      %335 = vector.load %arg6[%c0_116, %c0_117] : memref<1x128xf32, #tpu.memory_space<vmem>>, vector<1x128xf32>
      %c0_118 = arith.constant 0 : index
      %c0_119 = arith.constant 0 : index
      %336 = vector.load %arg9[%c0_118, %c0_119] : memref<1x128xf32, #tpu.memory_space<vmem>>, vector<1x128xf32>
      tpu.vector_store %arg9[%c0_118, %c0_119], %335 {strides = array<i32>} : memref<1x128xf32, #tpu.memory_space<vmem>>, vector<1x128xf32>,
    } else {
    }
    %c0 = arith.constant 0 : index
    %c0_1 = arith.constant 0 : index
    %3 = vector.load %arg1[%c0, %c0_1] : memref<8x128xbf16, #tpu.memory_space<vmem>>, vector<8x128xbf16>
    %c0_2 = arith.constant 0 : index
    %c0_3 = arith.constant 0 : index
    %4 = vector.load %arg13[%c0_2, %c0_3] : memref<128x512xbf16, #tpu.memory_space<vmem>>, vector<128x512xbf16>
    %cst = arith.constant dense<0.000000e+00> : vector<8x512xf32>
    %5 = tpu.matmul %3, %4, %cst {dimension_numbers = #tpu.dot_dimension_numbers<[1], [0], [0], [1], [0, 0, 1, 1], [], []>} : vector<8x128xbf16>, vector<128x512xbf16>, vector<8x512xf32> -> vector<8x512xf32>
    %c0_4 = arith.constant 0 : index
    %c0_5 = arith.constant 0 : index
    %6 = vector.load %arg4[%c0_4, %c0_5] : memref<1x512xf32, #tpu.memory_space<vmem>>, vector<1x512xf32>
    %7 = vector.broadcast %6 : vector<1x512xf32> to vector<8x512xf32>
    %8 = arith.addf %5, %7 : vector<8x512xf32>
    %c0_6 = arith.constant 0 : index
    %c0_7 = arith.constant 0 : index
    %9 = vector.load %arg10[%c0_6, %c0_7] : memref<8x512xf32, #tpu.memory_space<vmem>>, vector<8x512xf32>
    tpu.vector_store %arg10[%c0_6, %c0_7], %8 {strides = array<i32>} : memref<8x512xf32, #tpu.memory_space<vmem>>, vector<8x512xf32>,
    %c8_i32 = arith.constant 8 : i32
    %10 = arith.muli %arg0, %c8_i32 : i32
    %c0_8 = arith.constant 0 : index
    %c0_9 = arith.constant 0 : index
    %11 = vector.load %arg11[%c0_8, %c0_9] : memref<1x128xf32, #tpu.memory_space<vmem>>, vector<1x128xf32>
    %c0_10 = arith.constant 0 : index
    %c0_11 = arith.constant 0 : index
    %12 = vector.load %arg12[%c0_10, %c0_11] : memref<1x128xf32, #tpu.memory_space<vmem>>, vector<1x128xf32>
    %c0_i32_12 = arith.constant 0 : i32
    %c8_i32_13 = arith.constant 8 : i32
    %13 = arith.muli %c0_i32_12, %c8_i32_13 : i32
    %14 = tpu.assume_multiple %13, 8 : i32
    %c0_i32_14 = arith.constant 0 : i32
    %15 = arith.addi %14, %c0_i32_14 : i32
    %16 = arith.truncf %11 : vector<1x128xf32> to vector<1x128xbf16>
    %17 = arith.index_cast %15 : i32 to index
    %c0_15 = arith.constant 0 : index
    %18 = vector.load %arg10[%17, %c0_15] : memref<8x512xf32, #tpu.memory_space<vmem>>, vector<1x512xf32>
    %c0_16 = arith.constant 0 : index
    %c0_17 = arith.constant 0 : index
    %19 = vector.load %arg14[%c0_16, %c0_17] : memref<128x512xbf16, #tpu.memory_space<vmem>>, vector<128x512xbf16>
    %cst_18 = arith.constant dense<0.000000e+00> : vector<1x512xf32>
    %20 = tpu.matmul %16, %19, %cst_18 {dimension_numbers = #tpu.dot_dimension_numbers<[1], [0], [0], [1], [0, 0, 1, 1], [], []>} : vector<1x128xbf16>, vector<128x512xbf16>, vector<1x512xf32> -> vector<1x512xf32>
    %21 = arith.addf %18, %20 : vector<1x512xf32>
    %22 = vector.extract_strided_slice %21 {offsets = [0, 0], sizes = [1, 128], strides = [1, 1]} : vector<1x512xf32> to vector<1x128xf32>
    %23 = arith.negf %22 : vector<1x128xf32>
    %24 = math.exp %23 : vector<1x128xf32>
    %cst_19 = arith.constant 1.000000e+00 : f32
    %25 = vector.broadcast %cst_19 : f32 to vector<1x128xf32>
    %26 = arith.addf %25, %24 : vector<1x128xf32>
    %27 = arith.divf %25, %26 : vector<1x128xf32>
    %28 = vector.extract_strided_slice %21 {offsets = [0, 128], sizes = [1, 128], strides = [1, 1]} : vector<1x512xf32> to vector<1x128xf32>
    %29 = arith.negf %28 : vector<1x128xf32>
    %30 = math.exp %29 : vector<1x128xf32>
    %cst_20 = arith.constant 1.000000e+00 : f32
    %31 = vector.broadcast %cst_20 : f32 to vector<1x128xf32>
    %32 = arith.addf %31, %30 : vector<1x128xf32>
    %33 = arith.divf %31, %32 : vector<1x128xf32>
    %34 = vector.extract_strided_slice %21 {offsets = [0, 256], sizes = [1, 128], strides = [1, 1]} : vector<1x512xf32> to vector<1x128xf32>
    %35 = math.tanh %34 : vector<1x128xf32>
    %36 = vector.extract_strided_slice %21 {offsets = [0, 384], sizes = [1, 128], strides = [1, 1]} : vector<1x512xf32> to vector<1x128xf32>
    %37 = arith.negf %36 : vector<1x128xf32>
    %38 = math.exp %37 : vector<1x128xf32>
    %cst_21 = arith.constant 1.000000e+00 : f32
    %39 = vector.broadcast %cst_21 : f32 to vector<1x128xf32>
    %40 = arith.addf %39, %38 : vector<1x128xf32>
    %41 = arith.divf %39, %40 : vector<1x128xf32>
    %42 = arith.mulf %33, %12 : vector<1x128xf32>
    %43 = arith.mulf %27, %35 : vector<1x128xf32>
    %44 = arith.addf %42, %43 : vector<1x128xf32>
    %45 = math.tanh %44 : vector<1x128xf32>
    %46 = arith.mulf %41, %45 : vector<1x128xf32>
    %47 = arith.index_cast %15 : i32 to index
    %c0_22 = arith.constant 0 : index
    %48 = vector.load %arg7[%47, %c0_22] : memref<8x128xf32, #tpu.memory_space<vmem>>, vector<1x128xf32>
    tpu.vector_store %arg7[%47, %c0_22], %46 {strides = array<i32>} : memref<8x128xf32, #tpu.memory_space<vmem>>, vector<1x128xf32>,
    %49 = arith.addi %10, %15 : i32
    %c7_i32 = arith.constant 7 : i32
    %50 = arith.cmpi eq, %49, %c7_i32 : i32
    %51 = arith.extui %50 : i1 to i32
    %c0_i32_23 = arith.constant 0 : i32
    %52 = arith.cmpi ne, %51, %c0_i32_23 : i32
    scf.if %52 {
      %c0_100 = arith.constant 0 : index
      %c0_101 = arith.constant 0 : index
      %321 = vector.load %arg8[%c0_100, %c0_101] : memref<1x128xf32, #tpu.memory_space<vmem>>, vector<1x128xf32>
      tpu.vector_store %arg8[%c0_100, %c0_101], %46 {strides = array<i32>} : memref<1x128xf32, #tpu.memory_space<vmem>>, vector<1x128xf32>,
      %c0_102 = arith.constant 0 : index
      %c0_103 = arith.constant 0 : index
      %322 = vector.load %arg9[%c0_102, %c0_103] : memref<1x128xf32, #tpu.memory_space<vmem>>, vector<1x128xf32>
      tpu.vector_store %arg9[%c0_102, %c0_103], %44 {strides = array<i32>} : memref<1x128xf32, #tpu.memory_space<vmem>>, vector<1x128xf32>,
    } else {
    }
    %c1_i32 = arith.constant 1 : i32
    %53 = arith.addi %14, %c1_i32 : i32
    %54 = arith.truncf %46 : vector<1x128xf32> to vector<1x128xbf16>
    %55 = arith.index_cast %53 : i32 to index
    %c0_24 = arith.constant 0 : index
    %56 = vector.load %arg10[%55, %c0_24] : memref<8x512xf32, #tpu.memory_space<vmem>>, vector<1x512xf32>
    %c0_25 = arith.constant 0 : index
    %c0_26 = arith.constant 0 : index
    %57 = vector.load %arg14[%c0_25, %c0_26] : memref<128x512xbf16, #tpu.memory_space<vmem>>, vector<128x512xbf16>
    %cst_27 = arith.constant dense<0.000000e+00> : vector<1x512xf32>
    %58 = tpu.matmul %54, %57, %cst_27 {dimension_numbers = #tpu.dot_dimension_numbers<[1], [0], [0], [1], [0, 0, 1, 1], [], []>} : vector<1x128xbf16>, vector<128x512xbf16>, vector<1x512xf32> -> vector<1x512xf32>
    %59 = arith.addf %56, %58 : vector<1x512xf32>
    %60 = vector.extract_strided_slice %59 {offsets = [0, 0], sizes = [1, 128], strides = [1, 1]} : vector<1x512xf32> to vector<1x128xf32>
    %61 = arith.negf %60 : vector<1x128xf32>
    %62 = math.exp %61 : vector<1x128xf32>
    %cst_28 = arith.constant 1.000000e+00 : f32
    %63 = vector.broadcast %cst_28 : f32 to vector<1x128xf32>
    %64 = arith.addf %63, %62 : vector<1x128xf32>
    %65 = arith.divf %63, %64 : vector<1x128xf32>
    %66 = vector.extract_strided_slice %59 {offsets = [0, 128], sizes = [1, 128], strides = [1, 1]} : vector<1x512xf32> to vector<1x128xf32>
    %67 = arith.negf %66 : vector<1x128xf32>
    %68 = math.exp %67 : vector<1x128xf32>
    %cst_29 = arith.constant 1.000000e+00 : f32
    %69 = vector.broadcast %cst_29 : f32 to vector<1x128xf32>
    %70 = arith.addf %69, %68 : vector<1x128xf32>
    %71 = arith.divf %69, %70 : vector<1x128xf32>
    %72 = vector.extract_strided_slice %59 {offsets = [0, 256], sizes = [1, 128], strides = [1, 1]} : vector<1x512xf32> to vector<1x128xf32>
    %73 = math.tanh %72 : vector<1x128xf32>
    %74 = vector.extract_strided_slice %59 {offsets = [0, 384], sizes = [1, 128], strides = [1, 1]} : vector<1x512xf32> to vector<1x128xf32>
    %75 = arith.negf %74 : vector<1x128xf32>
    %76 = math.exp %75 : vector<1x128xf32>
    %cst_30 = arith.constant 1.000000e+00 : f32
    %77 = vector.broadcast %cst_30 : f32 to vector<1x128xf32>
    %78 = arith.addf %77, %76 : vector<1x128xf32>
    %79 = arith.divf %77, %78 : vector<1x128xf32>
    %80 = arith.mulf %71, %44 : vector<1x128xf32>
    %81 = arith.mulf %65, %73 : vector<1x128xf32>
    %82 = arith.addf %80, %81 : vector<1x128xf32>
    %83 = math.tanh %82 : vector<1x128xf32>
    %84 = arith.mulf %79, %83 : vector<1x128xf32>
    %85 = arith.index_cast %53 : i32 to index
    %c0_31 = arith.constant 0 : index
    %86 = vector.load %arg7[%85, %c0_31] : memref<8x128xf32, #tpu.memory_space<vmem>>, vector<1x128xf32>
    tpu.vector_store %arg7[%85, %c0_31], %84 {strides = array<i32>} : memref<8x128xf32, #tpu.memory_space<vmem>>, vector<1x128xf32>,
    %87 = arith.addi %10, %53 : i32
    %c7_i32_32 = arith.constant 7 : i32
    %88 = arith.cmpi eq, %87, %c7_i32_32 : i32
    %89 = arith.extui %88 : i1 to i32
    %c0_i32_33 = arith.constant 0 : i32
    %90 = arith.cmpi ne, %89, %c0_i32_33 : i32
    scf.if %90 {
      %c0_100 = arith.constant 0 : index
      %c0_101 = arith.constant 0 : index
      %321 = vector.load %arg8[%c0_100, %c0_101] : memref<1x128xf32, #tpu.memory_space<vmem>>, vector<1x128xf32>
      tpu.vector_store %arg8[%c0_100, %c0_101], %84 {strides = array<i32>} : memref<1x128xf32, #tpu.memory_space<vmem>>, vector<1x128xf32>,
      %c0_102 = arith.constant 0 : index
      %c0_103 = arith.constant 0 : index
      %322 = vector.load %arg9[%c0_102, %c0_103] : memref<1x128xf32, #tpu.memory_space<vmem>>, vector<1x128xf32>
      tpu.vector_store %arg9[%c0_102, %c0_103], %82 {strides = array<i32>} : memref<1x128xf32, #tpu.memory_space<vmem>>, vector<1x128xf32>,
    } else {
    }
    %c2_i32 = arith.constant 2 : i32
    %91 = arith.addi %14, %c2_i32 : i32
    %92 = arith.truncf %84 : vector<1x128xf32> to vector<1x128xbf16>
    %93 = arith.index_cast %91 : i32 to index
    %c0_34 = arith.constant 0 : index
    %94 = vector.load %arg10[%93, %c0_34] : memref<8x512xf32, #tpu.memory_space<vmem>>, vector<1x512xf32>
    %c0_35 = arith.constant 0 : index
    %c0_36 = arith.constant 0 : index
    %95 = vector.load %arg14[%c0_35, %c0_36] : memref<128x512xbf16, #tpu.memory_space<vmem>>, vector<128x512xbf16>
    %cst_37 = arith.constant dense<0.000000e+00> : vector<1x512xf32>
    %96 = tpu.matmul %92, %95, %cst_37 {dimension_numbers = #tpu.dot_dimension_numbers<[1], [0], [0], [1], [0, 0, 1, 1], [], []>} : vector<1x128xbf16>, vector<128x512xbf16>, vector<1x512xf32> -> vector<1x512xf32>
    %97 = arith.addf %94, %96 : vector<1x512xf32>
    %98 = vector.extract_strided_slice %97 {offsets = [0, 0], sizes = [1, 128], strides = [1, 1]} : vector<1x512xf32> to vector<1x128xf32>
    %99 = arith.negf %98 : vector<1x128xf32>
    %100 = math.exp %99 : vector<1x128xf32>
    %cst_38 = arith.constant 1.000000e+00 : f32
    %101 = vector.broadcast %cst_38 : f32 to vector<1x128xf32>
    %102 = arith.addf %101, %100 : vector<1x128xf32>
    %103 = arith.divf %101, %102 : vector<1x128xf32>
    %104 = vector.extract_strided_slice %97 {offsets = [0, 128], sizes = [1, 128], strides = [1, 1]} : vector<1x512xf32> to vector<1x128xf32>
    %105 = arith.negf %104 : vector<1x128xf32>
    %106 = math.exp %105 : vector<1x128xf32>
    %cst_39 = arith.constant 1.000000e+00 : f32
    %107 = vector.broadcast %cst_39 : f32 to vector<1x128xf32>
    %108 = arith.addf %107, %106 : vector<1x128xf32>
    %109 = arith.divf %107, %108 : vector<1x128xf32>
    %110 = vector.extract_strided_slice %97 {offsets = [0, 256], sizes = [1, 128], strides = [1, 1]} : vector<1x512xf32> to vector<1x128xf32>
    %111 = math.tanh %110 : vector<1x128xf32>
    %112 = vector.extract_strided_slice %97 {offsets = [0, 384], sizes = [1, 128], strides = [1, 1]} : vector<1x512xf32> to vector<1x128xf32>
    %113 = arith.negf %112 : vector<1x128xf32>
    %114 = math.exp %113 : vector<1x128xf32>
    %cst_40 = arith.constant 1.000000e+00 : f32
    %115 = vector.broadcast %cst_40 : f32 to vector<1x128xf32>
    %116 = arith.addf %115, %114 : vector<1x128xf32>
    %117 = arith.divf %115, %116 : vector<1x128xf32>
    %118 = arith.mulf %109, %82 : vector<1x128xf32>
    %119 = arith.mulf %103, %111 : vector<1x128xf32>
    %120 = arith.addf %118, %119 : vector<1x128xf32>
    %121 = math.tanh %120 : vector<1x128xf32>
    %122 = arith.mulf %117, %121 : vector<1x128xf32>
    %123 = arith.index_cast %91 : i32 to index
    %c0_41 = arith.constant 0 : index
    %124 = vector.load %arg7[%123, %c0_41] : memref<8x128xf32, #tpu.memory_space<vmem>>, vector<1x128xf32>
    tpu.vector_store %arg7[%123, %c0_41], %122 {strides = array<i32>} : memref<8x128xf32, #tpu.memory_space<vmem>>, vector<1x128xf32>,
    %125 = arith.addi %10, %91 : i32
    %c7_i32_42 = arith.constant 7 : i32
    %126 = arith.cmpi eq, %125, %c7_i32_42 : i32
    %127 = arith.extui %126 : i1 to i32
    %c0_i32_43 = arith.constant 0 : i32
    %128 = arith.cmpi ne, %127, %c0_i32_43 : i32
    scf.if %128 {
      %c0_100 = arith.constant 0 : index
      %c0_101 = arith.constant 0 : index
      %321 = vector.load %arg8[%c0_100, %c0_101] : memref<1x128xf32, #tpu.memory_space<vmem>>, vector<1x128xf32>
      tpu.vector_store %arg8[%c0_100, %c0_101], %122 {strides = array<i32>} : memref<1x128xf32, #tpu.memory_space<vmem>>, vector<1x128xf32>,
      %c0_102 = arith.constant 0 : index
      %c0_103 = arith.constant 0 : index
      %322 = vector.load %arg9[%c0_102, %c0_103] : memref<1x128xf32, #tpu.memory_space<vmem>>, vector<1x128xf32>
      tpu.vector_store %arg9[%c0_102, %c0_103], %120 {strides = array<i32>} : memref<1x128xf32, #tpu.memory_space<vmem>>, vector<1x128xf32>,
    } else {
    }
    %c3_i32 = arith.constant 3 : i32
    %129 = arith.addi %14, %c3_i32 : i32
    %130 = arith.truncf %122 : vector<1x128xf32> to vector<1x128xbf16>
    %131 = arith.index_cast %129 : i32 to index
    %c0_44 = arith.constant 0 : index
    %132 = vector.load %arg10[%131, %c0_44] : memref<8x512xf32, #tpu.memory_space<vmem>>, vector<1x512xf32>
    %c0_45 = arith.constant 0 : index
    %c0_46 = arith.constant 0 : index
    %133 = vector.load %arg14[%c0_45, %c0_46] : memref<128x512xbf16, #tpu.memory_space<vmem>>, vector<128x512xbf16>
    %cst_47 = arith.constant dense<0.000000e+00> : vector<1x512xf32>
    %134 = tpu.matmul %130, %133, %cst_47 {dimension_numbers = #tpu.dot_dimension_numbers<[1], [0], [0], [1], [0, 0, 1, 1], [], []>} : vector<1x128xbf16>, vector<128x512xbf16>, vector<1x512xf32> -> vector<1x512xf32>
    %135 = arith.addf %132, %134 : vector<1x512xf32>
    %136 = vector.extract_strided_slice %135 {offsets = [0, 0], sizes = [1, 128], strides = [1, 1]} : vector<1x512xf32> to vector<1x128xf32>
    %137 = arith.negf %136 : vector<1x128xf32>
    %138 = math.exp %137 : vector<1x128xf32>
    %cst_48 = arith.constant 1.000000e+00 : f32
    %139 = vector.broadcast %cst_48 : f32 to vector<1x128xf32>
    %140 = arith.addf %139, %138 : vector<1x128xf32>
    %141 = arith.divf %139, %140 : vector<1x128xf32>
    %142 = vector.extract_strided_slice %135 {offsets = [0, 128], sizes = [1, 128], strides = [1, 1]} : vector<1x512xf32> to vector<1x128xf32>
    %143 = arith.negf %142 : vector<1x128xf32>
    %144 = math.exp %143 : vector<1x128xf32>
    %cst_49 = arith.constant 1.000000e+00 : f32
    %145 = vector.broadcast %cst_49 : f32 to vector<1x128xf32>
    %146 = arith.addf %145, %144 : vector<1x128xf32>
    %147 = arith.divf %145, %146 : vector<1x128xf32>
    %148 = vector.extract_strided_slice %135 {offsets = [0, 256], sizes = [1, 128], strides = [1, 1]} : vector<1x512xf32> to vector<1x128xf32>
    %149 = math.tanh %148 : vector<1x128xf32>
    %150 = vector.extract_strided_slice %135 {offsets = [0, 384], sizes = [1, 128], strides = [1, 1]} : vector<1x512xf32> to vector<1x128xf32>
    %151 = arith.negf %150 : vector<1x128xf32>
    %152 = math.exp %151 : vector<1x128xf32>
    %cst_50 = arith.constant 1.000000e+00 : f32
    %153 = vector.broadcast %cst_50 : f32 to vector<1x128xf32>
    %154 = arith.addf %153, %152 : vector<1x128xf32>
    %155 = arith.divf %153, %154 : vector<1x128xf32>
    %156 = arith.mulf %147, %120 : vector<1x128xf32>
    %157 = arith.mulf %141, %149 : vector<1x128xf32>
    %158 = arith.addf %156, %157 : vector<1x128xf32>
    %159 = math.tanh %158 : vector<1x128xf32>
    %160 = arith.mulf %155, %159 : vector<1x128xf32>
    %161 = arith.index_cast %129 : i32 to index
    %c0_51 = arith.constant 0 : index
    %162 = vector.load %arg7[%161, %c0_51] : memref<8x128xf32, #tpu.memory_space<vmem>>, vector<1x128xf32>
    tpu.vector_store %arg7[%161, %c0_51], %160 {strides = array<i32>} : memref<8x128xf32, #tpu.memory_space<vmem>>, vector<1x128xf32>,
    %163 = arith.addi %10, %129 : i32
    %c7_i32_52 = arith.constant 7 : i32
    %164 = arith.cmpi eq, %163, %c7_i32_52 : i32
    %165 = arith.extui %164 : i1 to i32
    %c0_i32_53 = arith.constant 0 : i32
    %166 = arith.cmpi ne, %165, %c0_i32_53 : i32
    scf.if %166 {
      %c0_100 = arith.constant 0 : index
      %c0_101 = arith.constant 0 : index
      %321 = vector.load %arg8[%c0_100, %c0_101] : memref<1x128xf32, #tpu.memory_space<vmem>>, vector<1x128xf32>
      tpu.vector_store %arg8[%c0_100, %c0_101], %160 {strides = array<i32>} : memref<1x128xf32, #tpu.memory_space<vmem>>, vector<1x128xf32>,
      %c0_102 = arith.constant 0 : index
      %c0_103 = arith.constant 0 : index
      %322 = vector.load %arg9[%c0_102, %c0_103] : memref<1x128xf32, #tpu.memory_space<vmem>>, vector<1x128xf32>
      tpu.vector_store %arg9[%c0_102, %c0_103], %158 {strides = array<i32>} : memref<1x128xf32, #tpu.memory_space<vmem>>, vector<1x128xf32>,
    } else {
    }
    %c4_i32 = arith.constant 4 : i32
    %167 = arith.addi %14, %c4_i32 : i32
    %168 = arith.truncf %160 : vector<1x128xf32> to vector<1x128xbf16>
    %169 = arith.index_cast %167 : i32 to index
    %c0_54 = arith.constant 0 : index
    %170 = vector.load %arg10[%169, %c0_54] : memref<8x512xf32, #tpu.memory_space<vmem>>, vector<1x512xf32>
    %c0_55 = arith.constant 0 : index
    %c0_56 = arith.constant 0 : index
    %171 = vector.load %arg14[%c0_55, %c0_56] : memref<128x512xbf16, #tpu.memory_space<vmem>>, vector<128x512xbf16>
    %cst_57 = arith.constant dense<0.000000e+00> : vector<1x512xf32>
    %172 = tpu.matmul %168, %171, %cst_57 {dimension_numbers = #tpu.dot_dimension_numbers<[1], [0], [0], [1], [0, 0, 1, 1], [], []>} : vector<1x128xbf16>, vector<128x512xbf16>, vector<1x512xf32> -> vector<1x512xf32>
    %173 = arith.addf %170, %172 : vector<1x512xf32>
    %174 = vector.extract_strided_slice %173 {offsets = [0, 0], sizes = [1, 128], strides = [1, 1]} : vector<1x512xf32> to vector<1x128xf32>
    %175 = arith.negf %174 : vector<1x128xf32>
    %176 = math.exp %175 : vector<1x128xf32>
    %cst_58 = arith.constant 1.000000e+00 : f32
    %177 = vector.broadcast %cst_58 : f32 to vector<1x128xf32>
    %178 = arith.addf %177, %176 : vector<1x128xf32>
    %179 = arith.divf %177, %178 : vector<1x128xf32>
    %180 = vector.extract_strided_slice %173 {offsets = [0, 128], sizes = [1, 128], strides = [1, 1]} : vector<1x512xf32> to vector<1x128xf32>
    %181 = arith.negf %180 : vector<1x128xf32>
    %182 = math.exp %181 : vector<1x128xf32>
    %cst_59 = arith.constant 1.000000e+00 : f32
    %183 = vector.broadcast %cst_59 : f32 to vector<1x128xf32>
    %184 = arith.addf %183, %182 : vector<1x128xf32>
    %185 = arith.divf %183, %184 : vector<1x128xf32>
    %186 = vector.extract_strided_slice %173 {offsets = [0, 256], sizes = [1, 128], strides = [1, 1]} : vector<1x512xf32> to vector<1x128xf32>
    %187 = math.tanh %186 : vector<1x128xf32>
    %188 = vector.extract_strided_slice %173 {offsets = [0, 384], sizes = [1, 128], strides = [1, 1]} : vector<1x512xf32> to vector<1x128xf32>
    %189 = arith.negf %188 : vector<1x128xf32>
    %190 = math.exp %189 : vector<1x128xf32>
    %cst_60 = arith.constant 1.000000e+00 : f32
    %191 = vector.broadcast %cst_60 : f32 to vector<1x128xf32>
    %192 = arith.addf %191, %190 : vector<1x128xf32>
    %193 = arith.divf %191, %192 : vector<1x128xf32>
    %194 = arith.mulf %185, %158 : vector<1x128xf32>
    %195 = arith.mulf %179, %187 : vector<1x128xf32>
    %196 = arith.addf %194, %195 : vector<1x128xf32>
    %197 = math.tanh %196 : vector<1x128xf32>
    %198 = arith.mulf %193, %197 : vector<1x128xf32>
    %199 = arith.index_cast %167 : i32 to index
    %c0_61 = arith.constant 0 : index
    %200 = vector.load %arg7[%199, %c0_61] : memref<8x128xf32, #tpu.memory_space<vmem>>, vector<1x128xf32>
    tpu.vector_store %arg7[%199, %c0_61], %198 {strides = array<i32>} : memref<8x128xf32, #tpu.memory_space<vmem>>, vector<1x128xf32>,
    %201 = arith.addi %10, %167 : i32
    %c7_i32_62 = arith.constant 7 : i32
    %202 = arith.cmpi eq, %201, %c7_i32_62 : i32
    %203 = arith.extui %202 : i1 to i32
    %c0_i32_63 = arith.constant 0 : i32
    %204 = arith.cmpi ne, %203, %c0_i32_63 : i32
    scf.if %204 {
      %c0_100 = arith.constant 0 : index
      %c0_101 = arith.constant 0 : index
      %321 = vector.load %arg8[%c0_100, %c0_101] : memref<1x128xf32, #tpu.memory_space<vmem>>, vector<1x128xf32>
      tpu.vector_store %arg8[%c0_100, %c0_101], %198 {strides = array<i32>} : memref<1x128xf32, #tpu.memory_space<vmem>>, vector<1x128xf32>,
      %c0_102 = arith.constant 0 : index
      %c0_103 = arith.constant 0 : index
      %322 = vector.load %arg9[%c0_102, %c0_103] : memref<1x128xf32, #tpu.memory_space<vmem>>, vector<1x128xf32>
      tpu.vector_store %arg9[%c0_102, %c0_103], %196 {strides = array<i32>} : memref<1x128xf32, #tpu.memory_space<vmem>>, vector<1x128xf32>,
    } else {
    }
    %c5_i32 = arith.constant 5 : i32
    %205 = arith.addi %14, %c5_i32 : i32
    %206 = arith.truncf %198 : vector<1x128xf32> to vector<1x128xbf16>
    %207 = arith.index_cast %205 : i32 to index
    %c0_64 = arith.constant 0 : index
    %208 = vector.load %arg10[%207, %c0_64] : memref<8x512xf32, #tpu.memory_space<vmem>>, vector<1x512xf32>
    %c0_65 = arith.constant 0 : index
    %c0_66 = arith.constant 0 : index
    %209 = vector.load %arg14[%c0_65, %c0_66] : memref<128x512xbf16, #tpu.memory_space<vmem>>, vector<128x512xbf16>
    %cst_67 = arith.constant dense<0.000000e+00> : vector<1x512xf32>
    %210 = tpu.matmul %206, %209, %cst_67 {dimension_numbers = #tpu.dot_dimension_numbers<[1], [0], [0], [1], [0, 0, 1, 1], [], []>} : vector<1x128xbf16>, vector<128x512xbf16>, vector<1x512xf32> -> vector<1x512xf32>
    %211 = arith.addf %208, %210 : vector<1x512xf32>
    %212 = vector.extract_strided_slice %211 {offsets = [0, 0], sizes = [1, 128], strides = [1, 1]} : vector<1x512xf32> to vector<1x128xf32>
    %213 = arith.negf %212 : vector<1x128xf32>
    %214 = math.exp %213 : vector<1x128xf32>
    %cst_68 = arith.constant 1.000000e+00 : f32
    %215 = vector.broadcast %cst_68 : f32 to vector<1x128xf32>
    %216 = arith.addf %215, %214 : vector<1x128xf32>
    %217 = arith.divf %215, %216 : vector<1x128xf32>
    %218 = vector.extract_strided_slice %211 {offsets = [0, 128], sizes = [1, 128], strides = [1, 1]} : vector<1x512xf32> to vector<1x128xf32>
    %219 = arith.negf %218 : vector<1x128xf32>
    %220 = math.exp %219 : vector<1x128xf32>
    %cst_69 = arith.constant 1.000000e+00 : f32
    %221 = vector.broadcast %cst_69 : f32 to vector<1x128xf32>
    %222 = arith.addf %221, %220 : vector<1x128xf32>
    %223 = arith.divf %221, %222 : vector<1x128xf32>
    %224 = vector.extract_strided_slice %211 {offsets = [0, 256], sizes = [1, 128], strides = [1, 1]} : vector<1x512xf32> to vector<1x128xf32>
    %225 = math.tanh %224 : vector<1x128xf32>
    %226 = vector.extract_strided_slice %211 {offsets = [0, 384], sizes = [1, 128], strides = [1, 1]} : vector<1x512xf32> to vector<1x128xf32>
    %227 = arith.negf %226 : vector<1x128xf32>
    %228 = math.exp %227 : vector<1x128xf32>
    %cst_70 = arith.constant 1.000000e+00 : f32
    %229 = vector.broadcast %cst_70 : f32 to vector<1x128xf32>
    %230 = arith.addf %229, %228 : vector<1x128xf32>
    %231 = arith.divf %229, %230 : vector<1x128xf32>
    %232 = arith.mulf %223, %196 : vector<1x128xf32>
    %233 = arith.mulf %217, %225 : vector<1x128xf32>
    %234 = arith.addf %232, %233 : vector<1x128xf32>
    %235 = math.tanh %234 : vector<1x128xf32>
    %236 = arith.mulf %231, %235 : vector<1x128xf32>
    %237 = arith.index_cast %205 : i32 to index
    %c0_71 = arith.constant 0 : index
    %238 = vector.load %arg7[%237, %c0_71] : memref<8x128xf32, #tpu.memory_space<vmem>>, vector<1x128xf32>
    tpu.vector_store %arg7[%237, %c0_71], %236 {strides = array<i32>} : memref<8x128xf32, #tpu.memory_space<vmem>>, vector<1x128xf32>,
    %239 = arith.addi %10, %205 : i32
    %c7_i32_72 = arith.constant 7 : i32
    %240 = arith.cmpi eq, %239, %c7_i32_72 : i32
    %241 = arith.extui %240 : i1 to i32
    %c0_i32_73 = arith.constant 0 : i32
    %242 = arith.cmpi ne, %241, %c0_i32_73 : i32
    scf.if %242 {
      %c0_100 = arith.constant 0 : index
      %c0_101 = arith.constant 0 : index
      %321 = vector.load %arg8[%c0_100, %c0_101] : memref<1x128xf32, #tpu.memory_space<vmem>>, vector<1x128xf32>
      tpu.vector_store %arg8[%c0_100, %c0_101], %236 {strides = array<i32>} : memref<1x128xf32, #tpu.memory_space<vmem>>, vector<1x128xf32>,
      %c0_102 = arith.constant 0 : index
      %c0_103 = arith.constant 0 : index
      %322 = vector.load %arg9[%c0_102, %c0_103] : memref<1x128xf32, #tpu.memory_space<vmem>>, vector<1x128xf32>
      tpu.vector_store %arg9[%c0_102, %c0_103], %234 {strides = array<i32>} : memref<1x128xf32, #tpu.memory_space<vmem>>, vector<1x128xf32>,
    } else {
    }
    %c6_i32 = arith.constant 6 : i32
    %243 = arith.addi %14, %c6_i32 : i32
    %244 = arith.truncf %236 : vector<1x128xf32> to vector<1x128xbf16>
    %245 = arith.index_cast %243 : i32 to index
    %c0_74 = arith.constant 0 : index
    %246 = vector.load %arg10[%245, %c0_74] : memref<8x512xf32, #tpu.memory_space<vmem>>, vector<1x512xf32>
    %c0_75 = arith.constant 0 : index
    %c0_76 = arith.constant 0 : index
    %247 = vector.load %arg14[%c0_75, %c0_76] : memref<128x512xbf16, #tpu.memory_space<vmem>>, vector<128x512xbf16>
    %cst_77 = arith.constant dense<0.000000e+00> : vector<1x512xf32>
    %248 = tpu.matmul %244, %247, %cst_77 {dimension_numbers = #tpu.dot_dimension_numbers<[1], [0], [0], [1], [0, 0, 1, 1], [], []>} : vector<1x128xbf16>, vector<128x512xbf16>, vector<1x512xf32> -> vector<1x512xf32>
    %249 = arith.addf %246, %248 : vector<1x512xf32>
    %250 = vector.extract_strided_slice %249 {offsets = [0, 0], sizes = [1, 128], strides = [1, 1]} : vector<1x512xf32> to vector<1x128xf32>
    %251 = arith.negf %250 : vector<1x128xf32>
    %252 = math.exp %251 : vector<1x128xf32>
    %cst_78 = arith.constant 1.000000e+00 : f32
    %253 = vector.broadcast %cst_78 : f32 to vector<1x128xf32>
    %254 = arith.addf %253, %252 : vector<1x128xf32>
    %255 = arith.divf %253, %254 : vector<1x128xf32>
    %256 = vector.extract_strided_slice %249 {offsets = [0, 128], sizes = [1, 128], strides = [1, 1]} : vector<1x512xf32> to vector<1x128xf32>
    %257 = arith.negf %256 : vector<1x128xf32>
    %258 = math.exp %257 : vector<1x128xf32>
    %cst_79 = arith.constant 1.000000e+00 : f32
    %259 = vector.broadcast %cst_79 : f32 to vector<1x128xf32>
    %260 = arith.addf %259, %258 : vector<1x128xf32>
    %261 = arith.divf %259, %260 : vector<1x128xf32>
    %262 = vector.extract_strided_slice %249 {offsets = [0, 256], sizes = [1, 128], strides = [1, 1]} : vector<1x512xf32> to vector<1x128xf32>
    %263 = math.tanh %262 : vector<1x128xf32>
    %264 = vector.extract_strided_slice %249 {offsets = [0, 384], sizes = [1, 128], strides = [1, 1]} : vector<1x512xf32> to vector<1x128xf32>
    %265 = arith.negf %264 : vector<1x128xf32>
    %266 = math.exp %265 : vector<1x128xf32>
    %cst_80 = arith.constant 1.000000e+00 : f32
    %267 = vector.broadcast %cst_80 : f32 to vector<1x128xf32>
    %268 = arith.addf %267, %266 : vector<1x128xf32>
    %269 = arith.divf %267, %268 : vector<1x128xf32>
    %270 = arith.mulf %261, %234 : vector<1x128xf32>
    %271 = arith.mulf %255, %263 : vector<1x128xf32>
    %272 = arith.addf %270, %271 : vector<1x128xf32>
    %273 = math.tanh %272 : vector<1x128xf32>
    %274 = arith.mulf %269, %273 : vector<1x128xf32>
    %275 = arith.index_cast %243 : i32 to index
    %c0_81 = arith.constant 0 : index
    %276 = vector.load %arg7[%275, %c0_81] : memref<8x128xf32, #tpu.memory_space<vmem>>, vector<1x128xf32>
    tpu.vector_store %arg7[%275, %c0_81], %274 {strides = array<i32>} : memref<8x128xf32, #tpu.memory_space<vmem>>, vector<1x128xf32>,
    %277 = arith.addi %10, %243 : i32
    %c7_i32_82 = arith.constant 7 : i32
    %278 = arith.cmpi eq, %277, %c7_i32_82 : i32
    %279 = arith.extui %278 : i1 to i32
    %c0_i32_83 = arith.constant 0 : i32
    %280 = arith.cmpi ne, %279, %c0_i32_83 : i32
    scf.if %280 {
      %c0_100 = arith.constant 0 : index
      %c0_101 = arith.constant 0 : index
      %321 = vector.load %arg8[%c0_100, %c0_101] : memref<1x128xf32, #tpu.memory_space<vmem>>, vector<1x128xf32>
      tpu.vector_store %arg8[%c0_100, %c0_101], %274 {strides = array<i32>} : memref<1x128xf32, #tpu.memory_space<vmem>>, vector<1x128xf32>,
      %c0_102 = arith.constant 0 : index
      %c0_103 = arith.constant 0 : index
      %322 = vector.load %arg9[%c0_102, %c0_103] : memref<1x128xf32, #tpu.memory_space<vmem>>, vector<1x128xf32>
      tpu.vector_store %arg9[%c0_102, %c0_103], %272 {strides = array<i32>} : memref<1x128xf32, #tpu.memory_space<vmem>>, vector<1x128xf32>,
    } else {
    }
    %c7_i32_84 = arith.constant 7 : i32
    %281 = arith.addi %14, %c7_i32_84 : i32
    %282 = arith.truncf %274 : vector<1x128xf32> to vector<1x128xbf16>
    %283 = arith.index_cast %281 : i32 to index
    %c0_85 = arith.constant 0 : index
    %284 = vector.load %arg10[%283, %c0_85] : memref<8x512xf32, #tpu.memory_space<vmem>>, vector<1x512xf32>
    %c0_86 = arith.constant 0 : index
    %c0_87 = arith.constant 0 : index
    %285 = vector.load %arg14[%c0_86, %c0_87] : memref<128x512xbf16, #tpu.memory_space<vmem>>, vector<128x512xbf16>
    %cst_88 = arith.constant dense<0.000000e+00> : vector<1x512xf32>
    %286 = tpu.matmul %282, %285, %cst_88 {dimension_numbers = #tpu.dot_dimension_numbers<[1], [0], [0], [1], [0, 0, 1, 1], [], []>} : vector<1x128xbf16>, vector<128x512xbf16>, vector<1x512xf32> -> vector<1x512xf32>
    %287 = arith.addf %284, %286 : vector<1x512xf32>
    %288 = vector.extract_strided_slice %287 {offsets = [0, 0], sizes = [1, 128], strides = [1, 1]} : vector<1x512xf32> to vector<1x128xf32>
    %289 = arith.negf %288 : vector<1x128xf32>
    %290 = math.exp %289 : vector<1x128xf32>
    %cst_89 = arith.constant 1.000000e+00 : f32
    %291 = vector.broadcast %cst_89 : f32 to vector<1x128xf32>
    %292 = arith.addf %291, %290 : vector<1x128xf32>
    %293 = arith.divf %291, %292 : vector<1x128xf32>
    %294 = vector.extract_strided_slice %287 {offsets = [0, 128], sizes = [1, 128], strides = [1, 1]} : vector<1x512xf32> to vector<1x128xf32>
    %295 = arith.negf %294 : vector<1x128xf32>
    %296 = math.exp %295 : vector<1x128xf32>
    %cst_90 = arith.constant 1.000000e+00 : f32
    %297 = vector.broadcast %cst_90 : f32 to vector<1x128xf32>
    %298 = arith.addf %297, %296 : vector<1x128xf32>
    %299 = arith.divf %297, %298 : vector<1x128xf32>
    %300 = vector.extract_strided_slice %287 {offsets = [0, 256], sizes = [1, 128], strides = [1, 1]} : vector<1x512xf32> to vector<1x128xf32>
    %301 = math.tanh %300 : vector<1x128xf32>
    %302 = vector.extract_strided_slice %287 {offsets = [0, 384], sizes = [1, 128], strides = [1, 1]} : vector<1x512xf32> to vector<1x128xf32>
    %303 = arith.negf %302 : vector<1x128xf32>
    %304 = math.exp %303 : vector<1x128xf32>
    %cst_91 = arith.constant 1.000000e+00 : f32
    %305 = vector.broadcast %cst_91 : f32 to vector<1x128xf32>
    %306 = arith.addf %305, %304 : vector<1x128xf32>
    %307 = arith.divf %305, %306 : vector<1x128xf32>
    %308 = arith.mulf %299, %272 : vector<1x128xf32>
    %309 = arith.mulf %293, %301 : vector<1x128xf32>
    %310 = arith.addf %308, %309 : vector<1x128xf32>
    %311 = math.tanh %310 : vector<1x128xf32>
    %312 = arith.mulf %307, %311 : vector<1x128xf32>
    %313 = arith.index_cast %281 : i32 to index
    %c0_92 = arith.constant 0 : index
    %314 = vector.load %arg7[%313, %c0_92] : memref<8x128xf32, #tpu.memory_space<vmem>>, vector<1x128xf32>
    tpu.vector_store %arg7[%313, %c0_92], %312 {strides = array<i32>} : memref<8x128xf32, #tpu.memory_space<vmem>>, vector<1x128xf32>,
    %315 = arith.addi %10, %281 : i32
    %c7_i32_93 = arith.constant 7 : i32
    %316 = arith.cmpi eq, %315, %c7_i32_93 : i32
    %317 = arith.extui %316 : i1 to i32
    %c0_i32_94 = arith.constant 0 : i32
    %318 = arith.cmpi ne, %317, %c0_i32_94 : i32
    scf.if %318 {
      %c0_100 = arith.constant 0 : index
      %c0_101 = arith.constant 0 : index
      %321 = vector.load %arg8[%c0_100, %c0_101] : memref<1x128xf32, #tpu.memory_space<vmem>>, vector<1x128xf32>
      tpu.vector_store %arg8[%c0_100, %c0_101], %312 {strides = array<i32>} : memref<1x128xf32, #tpu.memory_space<vmem>>, vector<1x128xf32>,
      %c0_102 = arith.constant 0 : index
      %c0_103 = arith.constant 0 : index
      %322 = vector.load %arg9[%c0_102, %c0_103] : memref<1x128xf32, #tpu.memory_space<vmem>>, vector<1x128xf32>
      tpu.vector_store %arg9[%c0_102, %c0_103], %310 {strides = array<i32>} : memref<1x128xf32, #tpu.memory_space<vmem>>, vector<1x128xf32>,
    } else {
    }
    %c1_i32_95 = arith.constant 1 : i32
    %c0_96 = arith.constant 0 : index
    %c0_97 = arith.constant 0 : index
    %319 = vector.load %arg11[%c0_96, %c0_97] : memref<1x128xf32, #tpu.memory_space<vmem>>, vector<1x128xf32>
    tpu.vector_store %arg11[%c0_96, %c0_97], %312 {strides = array<i32>} : memref<1x128xf32, #tpu.memory_space<vmem>>, vector<1x128xf32>,
    %c0_98 = arith.constant 0 : index
    %c0_99 = arith.constant 0 : index
    %320 = vector.load %arg12[%c0_98, %c0_99] : memref<1x128xf32, #tpu.memory_space<vmem>>, vector<1x128xf32>
    tpu.vector_store %arg12[%c0_98, %c0_99], %310 {strides = array<i32>} : memref<1x128xf32, #tpu.memory_space<vmem>>, vector<1x128xf32>,
    return
  }
  func.func @transform_0(%arg0: i32) -> (i32, i32) {
    %c0_i32 = arith.constant 0 : i32
    %c0_i32_0 = arith.constant 0 : i32
    return %arg0, %c0_i32 : i32, i32
  }
  func.func @transform_3(%arg0: i32) -> (i32, i32) {
    %c0_i32 = arith.constant 0 : i32
    %c0_i32_0 = arith.constant 0 : i32
    %c0_i32_1 = arith.constant 0 : i32
    return %c0_i32, %c0_i32_0 : i32, i32
  }
  func.func @transform_4(%arg0: i32) -> (i32, i32) {
    %c0_i32 = arith.constant 0 : i32
    %c0_i32_0 = arith.constant 0 : i32
    %c0_i32_1 = arith.constant 0 : i32
    return %c0_i32, %c0_i32_0 : i32, i32
  }
  func.func @transform_5(%arg0: i32) -> (i32, i32) {
    %c0_i32 = arith.constant 0 : i32
    %c0_i32_0 = arith.constant 0 : i32
    %c0_i32_1 = arith.constant 0 : i32
    return %c0_i32, %c0_i32_0 : i32, i32
  }
  func.func @transform_6(%arg0: i32) -> (i32, i32) {
    %c0_i32 = arith.constant 0 : i32
    %c0_i32_0 = arith.constant 0 : i32
    return %arg0, %c0_i32 : i32, i32
  }
  func.func @transform_7(%arg0: i32) -> (i32, i32) {
    %c0_i32 = arith.constant 0 : i32
    %c0_i32_0 = arith.constant 0 : i32
    %c0_i32_1 = arith.constant 0 : i32
    return %c0_i32, %c0_i32_0 : i32, i32
  }
  func.func @transform_8(%arg0: i32) -> (i32, i32) {
    %c0_i32 = arith.constant 0 : i32
    %c0_i32_0 = arith.constant 0 : i32
    %c0_i32_1 = arith.constant 0 : i32
    return %c0_i32, %c0_i32_0 : i32, i32
  }
}

</mosaic_0001>

<bundles_post_ra>
// kernel: tpu_custom_call.1
= control target key start
LH: loop header
LB: loop body
LE: loop exit
PB: predicated region body
PF: predicated region fallthrough
CT: control target
= control target key end

     0   :  { %14 = vsyncpa [#allocation9], 0  ;;  %s2780_s0 = inlined_call_operand.hbm [shape: bf16[8,128], index: 0, kind: input, shape index: {}]   ;;  %s2781_s1 = inlined_call_operand.hbm [shape: bf16[128,512], index: 1, kind: input, shape index: {}]   ;;  %s2782_s2 = inlined_call_operand.hbm [shape: bf16[128,512], index: 2, kind: input, shape index: {}]   ;;  %s2783_s3 = inlined_call_operand.vmem [shape: f32[1,512], index: 3, kind: input, shape index: {}]   ;;  %s2784_s4 = inlined_call_operand.vmem [shape: f32[1,128], index: 4, kind: input, shape index: {}]   ;;  %s2785_s5 = inlined_call_operand.vmem [shape: f32[1,128], index: 5, kind: input, shape index: {}]   ;;  %s2786_s6 = inlined_call_operand.hbm [shape: f32[8,128], index: 6, kind: output, shape index: {0}]   ;;  %s2787_s7 = inlined_call_operand.hbm [shape: f32[1,128], index: 7, kind: output, shape index: {1}]   ;;  %s2788_s8 = inlined_call_operand.hbm [shape: f32[1,128], index: 8, kind: output, shape index: {2}]  }
   0x1   :  { %15 = vsyncpa [#allocation10], 0 }
   0x2   :  { %16 = vsyncpa [#allocation13], 0  ;;  %s2181_s27 = smov [#allocation8]   ;;  %s2083_s9 = scalar_lea.hbm %s2780_s0, 64 }
   0x3   :  { %s23_s28 = sshll.u32 %s2181_s27, 4  ;;  %p2084_p0 = scmp.ne.s32.totalorder %s2780_s0, %s2083_s9  ;;  %s24_s28 = int_to_ptr.vmem [resolvable:$true] %s23_s28 }
   0x4   :  { %p2087_p1 = scmp.lt.u32.totalorder %s2083_s9, %s2780_s0 }
   0x6   :  { %p2089_p2 = pnand %p2087_p1, %p2084_p0 }
   0x8   :  { %2092 = shalt.err (!%p2089_p2)
}
   0x9   :  { %s2093_s14 = scalar_lea.vmem %s24_s28, 64  ;;  %p2098_p4 = scmp.lt.s32.totalorder %s24_s28, %s24_s28 }
   0xa   :  { %p2094_p3 = scmp.ne.s32.totalorder %s24_s28, %s2093_s14  ;;  %p2099_p5 = scmp.lt.s32.totalorder %s2093_s14, %s2093_s14 }
   0xc   :  { %p2100_p6 = por %p2099_p5, %p2098_p4 }
   0xe   :  { %p2101_p7 = pnand %p2100_p6, %p2094_p3 }
  0x10   :  { %2104 = shalt.err (!%p2101_p7)
}
  0x11   :  { %26 = dma.hbm_to_vmem [thread:$0]  %s2780_s0, 64, %s24_s28, [#allocation9]  }
  0x12   :  { %2171 = dma.done.wait [#allocation9], 64  }
  0x13   :  { %2172 = vsyncadd [#allocation9], 4294967232 }
  0x14   :  { %s45_s17 = sld [smem:[#allocation0]]   ;;  %s2182_s18 = smov [#allocation5]  }
  0x15   :  { %s53_s19 = sshll.u32 %s2182_s18, 4  ;;  %s2183_s20 = smov 512   ;;  %s54_s19 = int_to_ptr.vmem [resolvable:$true] %s53_s19 }
  0x16   :  { %57 = sst [smem:[#allocation16]] %s2183_s20  ;;  %s2184_s21 = smov 4  }
  0x17   :  { %59 = sst [smem:[#allocation16 + $0x1]] %s2183_s20  ;;  %s2185_s22 = smov 64  }
  0x18   :  { %61 = sst [smem:[#allocation16 + $0x2]] %s2184_s21  ;;  %s2186_s24 = smov 128  }
  0x19   :  { %63 = sst [smem:[#allocation16 + $0x3]] %s2185_s22  ;;  %s2187_s26 = smov 2  }
  0x1a   :  { %s1907_s23 = sshll.u32 %s45_s17, 26  ;;  %65 = sst [smem:[#allocation16 + $0x4]] %s2186_s24 }
  0x1b   :  { %s1908_s25 = sadd.s32 134217728, %s1907_s23  ;;  %67 = sst [smem:[#allocation16 + $0x5]] %s2187_s26 }
  0x1c   :  { %s2188_s0 = smov 256   ;;  %71 = sst [smem:[#allocation16 + $0x7]] %s2185_s22 }
  0x1d   :  { %69 = sst [smem:[#allocation16 + $0x6]] %s2188_s0  ;;  %s2189_s27 = smov [#allocation7]  }
  0x1e   :  { %73 = sst [smem:[#allocation16 + $0x8]] %s2184_s21  ;;  %s2190_s28 = smov [#allocation15]  }
  0x1f   :  { %75 = dma.general %s2781_s1, 4096, %s54_s19, %s2189_s27, %s2190_s28, [#allocation16], %s1908_s25, 0  }
  0x20   :  { %92 = sst [smem:[#allocation18]] %s2183_s20  ;;  %s2191_s9 = smov [#allocation6]  }
  0x21   :  { %94 = sst [smem:[#allocation18 + $0x1]] %s2183_s20  ;;  %s88_s10 = sshll.u32 %s2191_s9, 4  ;;  %s89_s10 = int_to_ptr.vmem [resolvable:$true] %s88_s10 }
  0x22   :  { %96 = sst [smem:[#allocation18 + $0x2]] %s2184_s21  ;;  %s2192_s11 = smov [#allocation7 + $0x1]  }
  0x23   :  { %98 = sst [smem:[#allocation18 + $0x3]] %s2185_s22  ;;  %s2193_s12 = smov [#allocation17]  }
  0x24   :  { %100 = sst [smem:[#allocation18 + $0x4]] %s2186_s24 }
  0x25   :  { %102 = sst [smem:[#allocation18 + $0x5]] %s2187_s26 }
  0x26   :  { %104 = sst [smem:[#allocation18 + $0x6]] %s2188_s0 }
  0x27   :  { %106 = sst [smem:[#allocation18 + $0x7]] %s2185_s22 }
  0x28   :  { %108 = sst [smem:[#allocation18 + $0x8]] %s2184_s21 }
  0x29   :  { %110 = dma.general %s2782_s2, 4096, %s89_s10, %s2192_s11, %s2193_s12, [#allocation18], %s1908_s25, 0  }
  0x2a   :  { %2173 = dma.done.wait [#allocation7], 4096 }
  0x2b   :  { %2174 = vsyncadd [#allocation7], 4294963200 }
  0x2c   :  { %2175 = dma.done.wait [#allocation7 + $0x1], 4096 }
  0x2d   :  { %2176 = vsyncadd [#allocation7 + $0x1], 4294963200  ;;  %v117_v0 = vld [vmem:[%s2784_s4] sm:$0x1]  ;;  %v127_v4 = vld [vmem:[#allocation5 + $0x8] sm:$0xff]  ;;  %v2194_v14 = vmov 0  }
  0x2e   :  { %v119_v1 = vld [vmem:[%s2785_s5] sm:$0x1]  ;;  %118 = vst [vmem:[#allocation3] sm:$0x1] %v117_v0  ;;  %v126_v6 = vld [vmem:[#allocation5] sm:$0xff]  ;;  %180 = vmatprep.subr.bf16.mxu0 %v127_v4  ;;  %v128_v7 = vld [vmem:[#allocation5 + $0x10] sm:$0xff]  ;;  %212 = vmatprep.mubr.bf16.mxu0 %v2194_v14 }
  0x2f   :  { %v121_v2 = vld [vmem:[%s2784_s4] sm:$0x1]  ;;  %120 = vst [vmem:[#allocation4] sm:$0x1] %v119_v1  ;;  %v131_v8 = vld [vmem:[#allocation5 + $0x28] sm:$0xff]  ;;  %181 = vmatpush1.bf16.msra.mxu0 %v126_v6  ;;  %v130_v10 = vld [vmem:[#allocation5 + $0x20] sm:$0xff]  ;;  %253 = vmatprep.mubr.bf16.mxu1 %v2194_v14 }
  0x30   :  { %122 = vst [vmem:[#allocation12] sm:$0x1] %v121_v2  ;;  %v123_v3 = vld [vmem:[%s2785_s5] sm:$0x1]  ;;  %182 = vmatprep.subr.bf16.mxu0 %v131_v8  ;;  %v132_v11 = vld [vmem:[#allocation5 + $0x30] sm:$0xff]  ;;  %v135_v12 = vld [vmem:[#allocation5 + $0x48] sm:$0xff]  ;;  %v160_v8 = vlaneseq }
  0x31   :  { %124 = vst [vmem:[#allocation14] sm:$0x1] %v123_v3  ;;  %v129_v5 = vld [vmem:[#allocation5 + $0x18] sm:$0xff]  ;;  %v134_v15 = vld [vmem:[#allocation5 + $0x40] sm:$0xff]  ;;  %v136_v16 = vld [vmem:[#allocation5 + $0x50] sm:$0xff]  ;;  %s2197_s22 = smov [#allocation11]  }
  0x32   :  { %221 = vmatprep.subr.bf16.mxu1 %v129_v5  ;;  %v133_v9 = vld [vmem:[#allocation5 + $0x38] sm:$0xff]  ;;  %v139_v17 = vld [vmem:[#allocation5 + $0x68] sm:$0xff]  ;;  %v138_v19 = vld [vmem:[#allocation5 + $0x60] sm:$0xff]  ;;  %s1830_s23 = sshll.u32 %s2197_s22, 4  ;;  %s2198_s24 = smov [#allocation14]   ;;  %s2729_s23 = int_to_ptr.vmem [resolvable:$true] %s1830_s23 }
  0x33   :  { %222 = vmatpush1.bf16.msra.mxu1 %v128_v7  ;;  %v137_v13 = vld [vmem:[#allocation5 + $0x58] sm:$0xff]  ;;  %183 = vmatpush1.bf16.msra.mxu0 %v130_v10  ;;  %v140_v20 = vld [vmem:[#allocation5 + $0x70] sm:$0xff]  ;;  %v143_v21 = vld [vmem:[#allocation5 + $0x88] sm:$0xff]  ;;  %s1850_s25 = sshll.u32 %s2198_s24, 4  ;;  %s2731_s25 = int_to_ptr.vmem [resolvable:$true] %s1850_s25 }
  0x34   :  { %223 = vmatprep.subr.bf16.mxu1 %v133_v9  ;;  %184 = vmatprep.subr.bf16.mxu0 %v135_v12  ;;  %v141_v18 = vld [vmem:[#allocation5 + $0x78] sm:$0xff]  ;;  %v142_v23 = vld [vmem:[#allocation5 + $0x80] sm:$0xff]  ;;  %v144_v24 = vld [vmem:[#allocation5 + $0x90] sm:$0xff]  ;;  %v161_v9 = vshrl.u32 %v160_v8, 7 }
  0x35   :  { %v145_v22 = vld [vmem:[#allocation5 + $0x98] sm:$0xff]  ;;  %v147_v25 = vld [vmem:[#allocation5 + $0xa8] sm:$0xff]  ;;  %v146_v27 = vld [vmem:[#allocation5 + $0xa0] sm:$0xff] }
  0x36   :  { %v149_v26 = vld [vmem:[#allocation5 + $0xb8] sm:$0xff]  ;;  %v148_v28 = vld [vmem:[#allocation5 + $0xb0] sm:$0xff]  ;;  %v151_v29 = vld [vmem:[#allocation5 + $0xc8] sm:$0xff]  ;;  %v162_v10 = vsub.s32 0, %v161_v9 }
  0x37   :  { %224 = vmatpush1.bf16.msra.mxu1 %v132_v11  ;;  %185 = vmatpush1.bf16.msra.mxu0 %v134_v15  ;;  %v153_v30 = vld [vmem:[#allocation5 + $0xd8] sm:$0xff]  ;;  %v150_v31 = vld [vmem:[#allocation5 + $0xc0] sm:$0xff]  ;;  %v152_v32 = vld [vmem:[#allocation5 + $0xd0] sm:$0xff]  ;;  %v170_v11 = vsub.s32 2, %v161_v9  ;;  %v174_v15 = vsub.s32 3, %v161_v9 }
  0x38   :  { %225 = vmatprep.subr.bf16.mxu1 %v137_v13  ;;  %186 = vmatprep.subr.bf16.mxu0 %v139_v17  ;;  %v155_v33 = vld [vmem:[#allocation5 + $0xe8] sm:$0xff]  ;;  %v157_v34 = vld [vmem:[#allocation5 + $0xf8] sm:$0xff]  ;;  %v154_v35 = vld [vmem:[#allocation5 + $0xe0] sm:$0xff]  ;;  %v166_v13 = vsub.s32 1, %v161_v9 }
  0x39   :  { %v156_v36 = vld [vmem:[#allocation5 + $0xf0] sm:$0xff]  ;;  %v2276_v37 = vld [vmem:[#allocation6 + $0x8] sm:$0xff]  ;;  %v2278_v38 = vld [vmem:[#allocation6 + $0x18] sm:$0xff] }
  0x3a   :  { %v125_v39 = vld [vmem:[#allocation8] sm:$0xf]  ;;  %v2284_v41 = vld [vmem:[#allocation6 + $0x10] sm:$0xff]  ;;  %v2286_v42 = vld [vmem:[#allocation6 + $0x28] sm:$0xff] }
  0x3b   :  { %226 = vmatpush1.bf16.msra.mxu1 %v136_v16  ;;  %187 = vmatpush1.bf16.msra.mxu0 %v138_v19  ;;  %v2282_v40 = vld [vmem:[#allocation6] sm:$0xff]  ;;  %v2288_v43 = vld [vmem:[#allocation6 + $0x38] sm:$0xff]  ;;  %v2296_v45 = vld [vmem:[#allocation6 + $0x30] sm:$0xff] }
  0x3c   :  { %227 = vmatprep.subr.bf16.mxu1 %v141_v18  ;;  %188 = vmatprep.subr.bf16.mxu0 %v143_v21  ;;  %v2294_v44 = vld [vmem:[#allocation6 + $0x20] sm:$0xff]  ;;  %v2298_v46 = vld [vmem:[#allocation6 + $0x48] sm:$0xff]  ;;  %v2300_v47 = vld [vmem:[#allocation6 + $0x58] sm:$0xff] }
  0x3d   :  { %v2308_v48 = vld [vmem:[#allocation6 + $0x40] sm:$0xff]  ;;  %v2310_v49 = vld [vmem:[#allocation6 + $0x50] sm:$0xff]  ;;  %v2312_v50 = vld [vmem:[#allocation6 + $0x68] sm:$0xff] }
  0x3e   :  { %v2314_v51 = vld [vmem:[#allocation6 + $0x78] sm:$0xff]  ;;  %v2320_v52 = vld [vmem:[#allocation6 + $0x60] sm:$0xff]  ;;  %v2322_v53 = vld [vmem:[#allocation6 + $0x70] sm:$0xff] }
  0x3f   :  { %228 = vmatpush1.bf16.msra.mxu1 %v140_v20  ;;  %189 = vmatpush1.bf16.msra.mxu0 %v142_v23  ;;  %v2324_v54 = vld [vmem:[#allocation6 + $0x88] sm:$0xff]  ;;  %v2326_v55 = vld [vmem:[#allocation6 + $0x98] sm:$0xff]  ;;  %v2332_v56 = vld [vmem:[#allocation6 + $0x80] sm:$0xff] }
  0x40   :  { %229 = vmatprep.subr.bf16.mxu1 %v145_v22  ;;  %190 = vmatprep.subr.bf16.mxu0 %v147_v25  ;;  %v2334_v57 = vld [vmem:[#allocation6 + $0x90] sm:$0xff]  ;;  %v2336_v58 = vld [vmem:[#allocation6 + $0xa8] sm:$0xff]  ;;  %v2338_v59 = vld [vmem:[#allocation6 + $0xb8] sm:$0xff] }
  0x41   :  { %v2344_v60 = vld [vmem:[#allocation6 + $0xa0] sm:$0xff]  ;;  %v2346_v61 = vld [vmem:[#allocation6 + $0xb0] sm:$0xff]  ;;  %v2348_v62 = vld [vmem:[#allocation6 + $0xc8] sm:$0xff] }
  0x42   :  { %v2350_v63 = vld [vmem:[#allocation6 + $0xd8] sm:$0xff]  ;;  %v2356_v0 = vld [vmem:[#allocation6 + $0xc0] sm:$0xff]  ;;  %v2358_v1 = vld [vmem:[#allocation6 + $0xd0] sm:$0xff] }
  0x43   :  { %230 = vmatpush1.bf16.msra.mxu1 %v144_v24  ;;  %191 = vmatpush1.bf16.msra.mxu0 %v146_v27  ;;  %v2360_v2 = vld [vmem:[#allocation6 + $0xe8] sm:$0xff]  ;;  %v2362_v3 = vld [vmem:[#allocation6 + $0xf8] sm:$0xff]  ;;  %v2368_v5 = vld [vmem:[#allocation6 + $0xe0] sm:$0xff] }
  0x44   :  { %231 = vmatprep.subr.bf16.mxu1 %v149_v26  ;;  %192 = vmatprep.subr.bf16.mxu0 %v151_v29  ;;  %v267_v4 = vld [vmem:[#allocation3] sm:$0x1]  ;;  %v2370_v6 = vld [vmem:[#allocation6 + $0xf0] sm:$0xff] }
  0x45   :  { %v269_v7 = vpack.c.bf16 %v267_v4, %v267_v4  ;;  %v158_v12 = vld [vmem:[%s2783_s3] sm:$0xf]  ;;  %s2196_s3 = smov [#allocation12]  }
  0x46   :  { %v163_v16 = vrot.slane %v158_v12, %v162_v10  ;;  %v171_v17 = vrot.slane %v158_v12, %v170_v11  ;;  %v167_v18 = vrot.slane %v158_v12, %v166_v13  ;;  %v175_v19 = vrot.slane %v158_v12, %v174_v15  ;;  %s1840_s21 = sshll.u32 %s2196_s3, 4  ;;  %s1841_s21 = int_to_ptr.vmem [resolvable:$true] %s1840_s21 }
  0x47   :  { %232 = vmatpush1.bf16.msra.mxu1 %v148_v28  ;;  %193 = vmatpush1.bf16.msra.mxu0 %v150_v31  ;;  %s2105_s26 = scalar_lea.vmem %s1841_s21, 16  ;;  %s2109_s0 = scalar_lea.vmem %s1841_s21, 32 }
  0x48   :  { %233 = vmatprep.subr.bf16.mxu1 %v153_v30  ;;  %194 = vmatprep.subr.bf16.mxu0 %v155_v33  ;;  %p2106_p8 = scmp.ne.s32.totalorder %s1841_s21, %s2105_s26  ;;  %p2110_p9 = scmp.lt.s32.totalorder %s1841_s21, %s1841_s21 }
  0x49   :  { %p2111_p10 = scmp.lt.s32.totalorder %s2109_s0, %s2105_s26 }
  0x4b   :  { %234 = vmatpush1.bf16.msra.mxu1 %v152_v32  ;;  %195 = vmatpush1.bf16.msra.mxu0 %v154_v35  ;;  %v2195_v32 = vmov 1966171168   ;;  %p2112_p11 = por %p2111_p10, %p2110_p9 }
  0x4c   :  { %235 = vmatprep.subr.bf16.mxu1 %v157_v34  ;;  %306 = vmatprep.subr.bf16.mxu0 %v2276_v37  ;;  %v395_v33 = vunpack.c.l.s4 %v2195_v32 }
  0x4d   :  { %p2113_p12 = pnand %p2112_p11, %p2106_p8 }
  0x4e   :  { %213 = vmatmul.mubr.bf16.vlgmr.msra.gmra.mrb[0].mxu0 %v125_v39  ;;  %v396_v34 = vunpack.c.0.s8 %v395_v33  ;;  %v268_v33 = vld [vmem:[#allocation4] sm:$0x1] }
  0x4f   :  { %236 = vmatpush1.bf16.msra.mxu1 %v156_v36  ;;  %307 = vmatpush1.bf16.msra.mxu0 %v2282_v40 }
  0x50   :  { %347 = vmatprep.subr.bf16.mxu1 %v2278_v38  ;;  %308 = vmatprep.subr.bf16.mxu0 %v2286_v42  ;;  %v2413_v35 = vsub.s32 %v396_v34, %v161_v9 }
  0x51   :  { %338 = vmatprep.mubr.bf16.mxu0 %v2194_v14 }
  0x52   :  { %254 = vmatmul.mubr.bf16.vlgmr.msra.gmra.mrb[0].mxu1 %v125_v39 }
  0x53   :  { %348 = vmatpush1.bf16.msra.mxu1 %v2284_v41  ;;  %379 = vmatprep.mubr.bf16.mxu1 %v2194_v14 }
  0x54   :  { %349 = vmatprep.subr.bf16.mxu1 %v2288_v43  ;;  %309 = vmatpush1.bf16.msra.mxu0 %v2294_v44 }
  0x55   :  { %310 = vmatprep.subr.bf16.mxu0 %v2298_v46 }
  0x57   :  { %350 = vmatpush1.bf16.msra.mxu1 %v2296_v45 }
  0x58   :  { %351 = vmatprep.subr.bf16.mxu1 %v2300_v47  ;;  %311 = vmatpush1.bf16.msra.mxu0 %v2308_v48 }
  0x59   :  { %312 = vmatprep.subr.bf16.mxu0 %v2312_v50 }
  0x5b   :  { %352 = vmatpush1.bf16.msra.mxu1 %v2310_v49 }
  0x5c   :  { %353 = vmatprep.subr.bf16.mxu1 %v2314_v51  ;;  %313 = vmatpush1.bf16.msra.mxu0 %v2320_v52 }
  0x5d   :  { %314 = vmatprep.subr.bf16.mxu0 %v2324_v54 }
  0x5f   :  { %354 = vmatpush1.bf16.msra.mxu1 %v2322_v53 }
  0x60   :  { %355 = vmatprep.subr.bf16.mxu1 %v2326_v55  ;;  %315 = vmatpush1.bf16.msra.mxu0 %v2332_v56 }
  0x61   :  { %316 = vmatprep.subr.bf16.mxu0 %v2336_v58 }
  0x63   :  { %356 = vmatpush1.bf16.msra.mxu1 %v2334_v57 }
  0x64   :  { %357 = vmatprep.subr.bf16.mxu1 %v2338_v59  ;;  %317 = vmatpush1.bf16.msra.mxu0 %v2344_v60 }
  0x65   :  { %318 = vmatprep.subr.bf16.mxu0 %v2348_v62 }
  0x67   :  { %358 = vmatpush1.bf16.msra.mxu1 %v2346_v61 }
  0x68   :  { %359 = vmatprep.subr.bf16.mxu1 %v2350_v63  ;;  %319 = vmatpush1.bf16.msra.mxu0 %v2356_v0 }
  0x69   :  { %320 = vmatprep.subr.bf16.mxu0 %v2360_v2 }
  0x6b   :  { %360 = vmatpush1.bf16.msra.mxu1 %v2358_v1 }
  0x6c   :  { %361 = vmatprep.subr.bf16.mxu1 %v2362_v3  ;;  %321 = vmatpush1.bf16.msra.mxu0 %v2368_v5 }
  0x6d   :  { %500 = vmatprep.subr.bf16.mxu0 %v2276_v37 }
  0x6f   :  { %362 = vmatpush1.bf16.msra.mxu1 %v2370_v6  ;;  %339 = vmatmul.mubr.bf16.vlgmr.msra.gmra.mrb[4].mxu0 %v269_v7 }
  0x70   :  { %541 = vmatprep.subr.bf16.mxu1 %v2278_v38  ;;  %501 = vmatpush1.bf16.msra.mxu0 %v2282_v40 }
  0x71   :  { %502 = vmatprep.subr.bf16.mxu0 %v2286_v42  ;;  %532 = vmatprep.mubr.bf16.mxu0 %v2194_v14 }
  0x72   :  { %380 = vmatmul.mubr.bf16.vlgmr.msra.gmra.mrb[4].mxu1 %v269_v7 }
  0x73   :  { %542 = vmatpush1.bf16.msra.mxu1 %v2284_v41  ;;  %573 = vmatprep.mubr.bf16.mxu1 %v2194_v14 }
  0x74   :  { %543 = vmatprep.subr.bf16.mxu1 %v2288_v43  ;;  %503 = vmatpush1.bf16.msra.mxu0 %v2294_v44 }
  0x75   :  { %504 = vmatprep.subr.bf16.mxu0 %v2298_v46 }
  0x77   :  { %544 = vmatpush1.bf16.msra.mxu1 %v2296_v45 }
  0x78   :  { %545 = vmatprep.subr.bf16.mxu1 %v2300_v47  ;;  %505 = vmatpush1.bf16.msra.mxu0 %v2308_v48 }
  0x79   :  { %506 = vmatprep.subr.bf16.mxu0 %v2312_v50 }
  0x7b   :  { %546 = vmatpush1.bf16.msra.mxu1 %v2310_v49 }
  0x7c   :  { %547 = vmatprep.subr.bf16.mxu1 %v2314_v51  ;;  %507 = vmatpush1.bf16.msra.mxu0 %v2320_v52 }
  0x7d   :  { %508 = vmatprep.subr.bf16.mxu0 %v2324_v54 }
  0x7f   :  { %548 = vmatpush1.bf16.msra.mxu1 %v2322_v53 }
  0x80   :  { %549 = vmatprep.subr.bf16.mxu1 %v2326_v55  ;;  %509 = vmatpush1.bf16.msra.mxu0 %v2332_v56 }
  0x81   :  { %510 = vmatprep.subr.bf16.mxu0 %v2336_v58 }
  0x83   :  { %550 = vmatpush1.bf16.msra.mxu1 %v2334_v57 }
  0x84   :  { %551 = vmatprep.subr.bf16.mxu1 %v2338_v59  ;;  %511 = vmatpush1.bf16.msra.mxu0 %v2344_v60 }
  0x85   :  { %512 = vmatprep.subr.bf16.mxu0 %v2348_v62 }
  0x87   :  { %552 = vmatpush1.bf16.msra.mxu1 %v2346_v61 }
  0x88   :  { %553 = vmatprep.subr.bf16.mxu1 %v2350_v63  ;;  %513 = vmatpush1.bf16.msra.mxu0 %v2356_v0 }
  0x89   :  { %514 = vmatprep.subr.bf16.mxu0 %v2360_v2 }
  0x8b   :  { %554 = vmatpush1.bf16.msra.mxu1 %v2358_v1 }
  0x8c   :  { %555 = vmatprep.subr.bf16.mxu1 %v2362_v3  ;;  %515 = vmatpush1.bf16.msra.mxu0 %v2368_v5 }
  0x8d   :  { %695 = vmatprep.subr.bf16.mxu0 %v2276_v37 }
  0x8f   :  { %556 = vmatpush1.bf16.msra.mxu1 %v2370_v6 }
  0x90   :  { %736 = vmatprep.subr.bf16.mxu1 %v2278_v38 }
 0x121   :  { %v214_v20 = vpop.f32.mrb[0].mxu0 }
 0x122   :  { %v215_v22 = vadd.f32 %v214_v20, %v163_v16  ;;  %v216_v24 = vpop.f32.mrb[1].mxu0 }
 0x123   :  { %v217_v26 = vadd.f32 %v216_v24, %v167_v18  ;;  %v218_v28 = vpop.f32.mrb[2].mxu0 }
 0x124   :  { %262 = vst [vmem:[#allocation2] sm:$0xff] %v215_v22  ;;  %v219_v30 = vpop.f32.mrb[3].mxu0 }
 0x125   :  { %v255_v21 = vpop.f32.mrb[0].mxu1  ;;  %263 = vst [vmem:[#allocation2 + $0x8] sm:$0xff] %v217_v26 }
 0x126   :  { %v256_v23 = vadd.f32 %v255_v21, %v171_v17  ;;  %v257_v25 = vpop.f32.mrb[1].mxu1 }
 0x127   :  { %v258_v27 = vadd.f32 %v257_v25, %v175_v19  ;;  %v259_v29 = vpop.f32.mrb[2].mxu1 }
 0x128   :  { %264 = vst [vmem:[#allocation2 + $0x10] sm:$0xff] %v256_v23  ;;  %v260_v31 = vpop.f32.mrb[3].mxu1 }
 0x129   :  { %265 = vst [vmem:[#allocation2 + $0x18] sm:$0xff] %v258_v27 }
 0x130   :  { %v273_v20 = vld [vmem:[#allocation2] ss:$8 sm:$0xf] }
 0x142   :  { %v340_v36 = vpop.f32.mrb[4].mxu0 }
 0x143   :  { %v342_v4 = vpop.f32.mrb[5].mxu0 }
 0x144   :  { %v392_v8 = vcombine.low %v340_v36, %v342_v4  ;;  %v344_v11 = vpop.f32.mrb[6].mxu0 }
 0x145   :  { %v381_v39 = vpop.f32.mrb[4].mxu1  ;;  %v345_v13 = vpop.f32.mrb[7].mxu0 }
 0x146   :  { %v383_v7 = vpop.f32.mrb[5].mxu1  ;;  %v400_v16 = vrot.slane %v392_v8, %v2413_v35 }
 0x147   :  { %v393_v10 = vcombine.low %v381_v39, %v383_v7  ;;  %v385_v12 = vpop.f32.mrb[6].mxu1 }
 0x148   :  { %v386_v15 = vpop.f32.mrb[7].mxu1 }
 0x149   :  { %v407_v17 = vrot.slane %v393_v10, %v2413_v35 }
 0x14b   :  { %v408_v18 = vcombine.low %v400_v16, %v407_v17 }
 0x14d   :  { %v415_v19 = vrot.slane %v408_v18, %v2413_v35 }
 0x14f   :  { %v417_v9 = vadd.f32 %v415_v19, %v273_v20 }
 0x151   :  { %v1911_v21 = vmul.f32 -1.442695, %v417_v9  ;;  %v425_v22 = vrot.slane %v417_v9, 1  ;;  %v436_v24 = vrot.slane %v417_v9, 3  ;;  %v433_v27 = vrot.slane %v417_v9, 2 }
 0x153   :  { %1955 = vpow2.f32 %v1911_v21  ;;  %v1912_v23 = vmul.f32 -1.442695, %v425_v22  ;;  %v1913_v25 = vmul.f32 -1.442695, %v436_v24 }
 0x155   :  { %1957 = vpow2.f32 %v1912_v23 }
 0x156   :  { %1959 = vpow2.f32 %v1913_v25 }
 0x15d   :  { %v1956_v26 = vpop.eup %1955 }
 0x15e   :  { %v421_v28 = vadd.f32 1.0, %v1956_v26 }
 0x15f   :  { %v1958_v29 = vpop.eup %1957 }
 0x160   :  { %1961 = vrcp.f32 %v421_v28  ;;  %v430_v30 = vadd.f32 1.0, %v1958_v29  ;;  %v1960_v31 = vpop.eup %1959  ;;  %v467_v28 = vld [vmem:[#allocation2 + $0x1] ss:$8 sm:$0xf] }
 0x161   :  { %1963 = vtanh.f32 %v433_v27  ;;  %v441_v39 = vadd.f32 1.0, %v1960_v31 }
 0x162   :  { %1965 = vrcp.f32 %v430_v30 }
 0x163   :  { %1967 = vrcp.f32 %v441_v39 }
 0x16a   :  { %v1962_v32 = vpop.eup %1961 }
 0x16b   :  { %v1964_v34 = vpop.eup %1963 }
 0x16c   :  { %v1966_v36 = vpop.eup %1965  ;;  %v445_v7 = vmul.f32 %v1964_v34, %v1962_v32 }
 0x16d   :  { %v444_v4 = vmul.f32 %v1966_v36, %v268_v33  ;;  %v1968_v10 = vpop.eup %1967 }
 0x16f   :  { %v2418_v8 = vadd.f32 %v445_v7, %v444_v4 }
 0x171   :  { %1969 = vtanh.f32 %v2418_v8 }
 0x17b   :  { %v1970_v11 = vpop.eup %1969 }
 0x17c   :  { %v448_v12 = vmul.f32 %v1970_v11, %v1968_v10 }
 0x17e   :  { %449 = vst [vmem:[#allocation11] sm:$0x1] %v448_v12  ;;  %v458_v13 = vpack.c.bf16 %v448_v12, %v448_v12 }
 0x180   :  { %533 = vmatmul.mubr.bf16.vlgmr.msra.gmra.mrb[8].mxu0 %v458_v13  ;;  %574 = vmatmul.mubr.bf16.vlgmr.msra.gmra.mrb[8].mxu1 %v458_v13 }
 0x181   :  { %696 = vmatpush1.bf16.msra.mxu0 %v2282_v40  ;;  %737 = vmatpush1.bf16.msra.mxu1 %v2284_v41 }
 0x182   :  { %697 = vmatprep.subr.bf16.mxu0 %v2286_v42  ;;  %738 = vmatprep.subr.bf16.mxu1 %v2288_v43 }
 0x183   :  { %727 = vmatprep.mubr.bf16.mxu0 %v2194_v14  ;;  %768 = vmatprep.mubr.bf16.mxu1 %v2194_v14 }
 0x185   :  { %698 = vmatpush1.bf16.msra.mxu0 %v2294_v44  ;;  %739 = vmatpush1.bf16.msra.mxu1 %v2296_v45 }
 0x186   :  { %699 = vmatprep.subr.bf16.mxu0 %v2298_v46  ;;  %740 = vmatprep.subr.bf16.mxu1 %v2300_v47 }
 0x189   :  { %700 = vmatpush1.bf16.msra.mxu0 %v2308_v48  ;;  %741 = vmatpush1.bf16.msra.mxu1 %v2310_v49 }
 0x18a   :  { %701 = vmatprep.subr.bf16.mxu0 %v2312_v50  ;;  %742 = vmatprep.subr.bf16.mxu1 %v2314_v51 }
 0x18d   :  { %702 = vmatpush1.bf16.msra.mxu0 %v2320_v52  ;;  %743 = vmatpush1.bf16.msra.mxu1 %v2322_v53 }
 0x18e   :  { %703 = vmatprep.subr.bf16.mxu0 %v2324_v54  ;;  %744 = vmatprep.subr.bf16.mxu1 %v2326_v55 }
 0x191   :  { %704 = vmatpush1.bf16.msra.mxu0 %v2332_v56  ;;  %745 = vmatpush1.bf16.msra.mxu1 %v2334_v57 }
 0x192   :  { %705 = vmatprep.subr.bf16.mxu0 %v2336_v58  ;;  %746 = vmatprep.subr.bf16.mxu1 %v2338_v59 }
 0x195   :  { %706 = vmatpush1.bf16.msra.mxu0 %v2344_v60  ;;  %747 = vmatpush1.bf16.msra.mxu1 %v2346_v61 }
 0x196   :  { %707 = vmatprep.subr.bf16.mxu0 %v2348_v62  ;;  %748 = vmatprep.subr.bf16.mxu1 %v2350_v63 }
 0x199   :  { %708 = vmatpush1.bf16.msra.mxu0 %v2356_v0  ;;  %749 = vmatpush1.bf16.msra.mxu1 %v2358_v1 }
 0x19a   :  { %709 = vmatprep.subr.bf16.mxu0 %v2360_v2  ;;  %750 = vmatprep.subr.bf16.mxu1 %v2362_v3 }
 0x19d   :  { %710 = vmatpush1.bf16.msra.mxu0 %v2368_v5  ;;  %751 = vmatpush1.bf16.msra.mxu1 %v2370_v6 }
 0x19e   :  { %890 = vmatprep.subr.bf16.mxu0 %v2276_v37  ;;  %931 = vmatprep.subr.bf16.mxu1 %v2278_v38 }
 0x253   :  { %v534_v15 = vpop.f32.mrb[8].mxu0  ;;  %v575_v16 = vpop.f32.mrb[8].mxu1 }
 0x254   :  { %v536_v17 = vpop.f32.mrb[9].mxu0  ;;  %v577_v18 = vpop.f32.mrb[9].mxu1 }
 0x255   :  { %v586_v19 = vcombine.low %v534_v15, %v536_v17  ;;  %v587_v20 = vcombine.low %v575_v16, %v577_v18  ;;  %v538_v9 = vpop.f32.mrb[10].mxu0  ;;  %v579_v21 = vpop.f32.mrb[10].mxu1 }
 0x256   :  { %v539_v22 = vpop.f32.mrb[11].mxu0  ;;  %v580_v23 = vpop.f32.mrb[11].mxu1 }
 0x257   :  { %v594_v24 = vrot.slane %v586_v19, %v2413_v35  ;;  %v601_v25 = vrot.slane %v587_v20, %v2413_v35 }
 0x259   :  { %v602_v26 = vcombine.low %v594_v24, %v601_v25 }
 0x25b   :  { %v609_v27 = vrot.slane %v602_v26, %v2413_v35 }
 0x25d   :  { %v611_v29 = vadd.f32 %v609_v27, %v467_v28 }
 0x25f   :  { %v1914_v30 = vmul.f32 -1.442695, %v611_v29  ;;  %v619_v31 = vrot.slane %v611_v29, 1  ;;  %v630_v33 = vrot.slane %v611_v29, 3  ;;  %v627_v39 = vrot.slane %v611_v29, 2 }
 0x261   :  { %1971 = vpow2.f32 %v1914_v30  ;;  %v1915_v32 = vmul.f32 -1.442695, %v619_v31  ;;  %v1916_v34 = vmul.f32 -1.442695, %v630_v33 }
 0x263   :  { %1973 = vpow2.f32 %v1915_v32 }
 0x264   :  { %1975 = vpow2.f32 %v1916_v34 }
 0x26b   :  { %v1972_v36 = vpop.eup %1971 }
 0x26c   :  { %v615_v4 = vadd.f32 1.0, %v1972_v36 }
 0x26d   :  { %v1974_v7 = vpop.eup %1973 }
 0x26e   :  { %1977 = vrcp.f32 %v615_v4  ;;  %v624_v10 = vadd.f32 1.0, %v1974_v7  ;;  %v1976_v11 = vpop.eup %1975 }
 0x26f   :  { %1979 = vtanh.f32 %v627_v39  ;;  %v635_v16 = vadd.f32 1.0, %v1976_v11 }
 0x270   :  { %1981 = vrcp.f32 %v624_v10 }
 0x271   :  { %1983 = vrcp.f32 %v635_v16 }
 0x278   :  { %v1978_v12 = vpop.eup %1977 }
 0x279   :  { %v1980_v13 = vpop.eup %1979 }
 0x27a   :  { %v1982_v15 = vpop.eup %1981  ;;  %v639_v18 = vmul.f32 %v1980_v13, %v1978_v12 }
 0x27b   :  { %v638_v17 = vmul.f32 %v1982_v15, %v2418_v8  ;;  %v1984_v20 = vpop.eup %1983 }
 0x27d   :  { %v2459_v19 = vadd.f32 %v639_v18, %v638_v17 }
 0x27f   :  { %1985 = vtanh.f32 %v2459_v19 }
 0x289   :  { %v1986_v9 = vpop.eup %1985 }
 0x28a   :  { %v642_v21 = vmul.f32 %v1986_v9, %v1984_v20 }
 0x28c   :  { %644 = vst [vmem:[#allocation11 + $0x1] sm:$0x1] %v642_v21  ;;  %v653_v22 = vpack.c.bf16 %v642_v21, %v642_v21 }
 0x28e   :  { %728 = vmatmul.mubr.bf16.vlgmr.msra.gmra.mrb[12].mxu0 %v653_v22  ;;  %769 = vmatmul.mubr.bf16.vlgmr.msra.gmra.mrb[12].mxu1 %v653_v22 }
 0x28f   :  { %891 = vmatpush1.bf16.msra.mxu0 %v2282_v40  ;;  %932 = vmatpush1.bf16.msra.mxu1 %v2284_v41 }
 0x290   :  { %892 = vmatprep.subr.bf16.mxu0 %v2286_v42  ;;  %933 = vmatprep.subr.bf16.mxu1 %v2288_v43 }
 0x291   :  { %922 = vmatprep.mubr.bf16.mxu0 %v2194_v14  ;;  %963 = vmatprep.mubr.bf16.mxu1 %v2194_v14 }
 0x293   :  { %893 = vmatpush1.bf16.msra.mxu0 %v2294_v44  ;;  %934 = vmatpush1.bf16.msra.mxu1 %v2296_v45 }
 0x294   :  { %894 = vmatprep.subr.bf16.mxu0 %v2298_v46  ;;  %935 = vmatprep.subr.bf16.mxu1 %v2300_v47 }
 0x297   :  { %895 = vmatpush1.bf16.msra.mxu0 %v2308_v48  ;;  %936 = vmatpush1.bf16.msra.mxu1 %v2310_v49 }
 0x298   :  { %896 = vmatprep.subr.bf16.mxu0 %v2312_v50  ;;  %937 = vmatprep.subr.bf16.mxu1 %v2314_v51 }
 0x29b   :  { %897 = vmatpush1.bf16.msra.mxu0 %v2320_v52  ;;  %938 = vmatpush1.bf16.msra.mxu1 %v2322_v53 }
 0x29c   :  { %898 = vmatprep.subr.bf16.mxu0 %v2324_v54  ;;  %939 = vmatprep.subr.bf16.mxu1 %v2326_v55 }
 0x29f   :  { %899 = vmatpush1.bf16.msra.mxu0 %v2332_v56  ;;  %940 = vmatpush1.bf16.msra.mxu1 %v2334_v57 }
 0x2a0   :  { %900 = vmatprep.subr.bf16.mxu0 %v2336_v58  ;;  %941 = vmatprep.subr.bf16.mxu1 %v2338_v59 }
 0x2a3   :  { %901 = vmatpush1.bf16.msra.mxu0 %v2344_v60  ;;  %942 = vmatpush1.bf16.msra.mxu1 %v2346_v61 }
 0x2a4   :  { %902 = vmatprep.subr.bf16.mxu0 %v2348_v62  ;;  %943 = vmatprep.subr.bf16.mxu1 %v2350_v63 }
 0x2a7   :  { %903 = vmatpush1.bf16.msra.mxu0 %v2356_v0  ;;  %944 = vmatpush1.bf16.msra.mxu1 %v2358_v1 }
 0x2a8   :  { %904 = vmatprep.subr.bf16.mxu0 %v2360_v2  ;;  %945 = vmatprep.subr.bf16.mxu1 %v2362_v3 }
 0x2ab   :  { %905 = vmatpush1.bf16.msra.mxu0 %v2368_v5  ;;  %946 = vmatpush1.bf16.msra.mxu1 %v2370_v6 }
 0x2ac   :  { %1085 = vmatprep.subr.bf16.mxu0 %v2276_v37  ;;  %1126 = vmatprep.subr.bf16.mxu1 %v2278_v38  ;;  %v662_v37 = vld [vmem:[#allocation2 + $0x2] ss:$8 sm:$0xf] }
 0x361   :  { %v729_v8 = vpop.f32.mrb[12].mxu0  ;;  %v770_v23 = vpop.f32.mrb[12].mxu1 }
 0x362   :  { %v731_v24 = vpop.f32.mrb[13].mxu0  ;;  %v772_v25 = vpop.f32.mrb[13].mxu1 }
 0x363   :  { %v781_v26 = vcombine.low %v729_v8, %v731_v24  ;;  %v782_v27 = vcombine.low %v770_v23, %v772_v25  ;;  %v733_v28 = vpop.f32.mrb[14].mxu0  ;;  %v774_v29 = vpop.f32.mrb[14].mxu1 }
 0x364   :  { %v734_v30 = vpop.f32.mrb[15].mxu0  ;;  %v775_v31 = vpop.f32.mrb[15].mxu1 }
 0x365   :  { %v789_v32 = vrot.slane %v781_v26, %v2413_v35  ;;  %v796_v33 = vrot.slane %v782_v27, %v2413_v35 }
 0x367   :  { %v797_v34 = vcombine.low %v789_v32, %v796_v33 }
 0x369   :  { %v804_v36 = vrot.slane %v797_v34, %v2413_v35 }
 0x36b   :  { %v806_v39 = vadd.f32 %v804_v36, %v662_v37  ;;  %v2544_v37 = vld [vmem:[#allocation6 + $0x8] sm:$0xff] }
 0x36d   :  { %v1917_v38 = vmul.f32 -1.442695, %v806_v39  ;;  %v814_v4 = vrot.slane %v806_v39, 1  ;;  %v825_v10 = vrot.slane %v806_v39, 3  ;;  %v822_v13 = vrot.slane %v806_v39, 2  ;;  %v2546_v39 = vld [vmem:[#allocation6 + $0x18] sm:$0xff] }
 0x36f   :  { %1987 = vpow2.f32 %v1917_v38  ;;  %v1918_v7 = vmul.f32 -1.442695, %v814_v4  ;;  %v1919_v11 = vmul.f32 -1.442695, %v825_v10  ;;  %v2550_v38 = vld [vmem:[#allocation6] sm:$0xff]  ;;  %v2552_v4 = vld [vmem:[#allocation6 + $0x10] sm:$0xff] }
 0x370   :  { %v2558_v10 = vld [vmem:[#allocation6 + $0x38] sm:$0xff] }
 0x371   :  { %1989 = vpow2.f32 %v1918_v7  ;;  %v2554_v7 = vld [vmem:[#allocation6 + $0x28] sm:$0xff] }
 0x372   :  { %1991 = vpow2.f32 %v1919_v11  ;;  %v2562_v11 = vld [vmem:[#allocation6 + $0x20] sm:$0xff] }
 0x379   :  { %v1988_v12 = vpop.eup %1987 }
 0x37a   :  { %v810_v15 = vadd.f32 1.0, %v1988_v12  ;;  %v2564_v12 = vld [vmem:[#allocation6 + $0x30] sm:$0xff] }
 0x37b   :  { %v1990_v16 = vpop.eup %1989 }
 0x37c   :  { %1993 = vrcp.f32 %v810_v15  ;;  %v819_v17 = vadd.f32 1.0, %v1990_v16  ;;  %v1992_v18 = vpop.eup %1991  ;;  %v2568_v15 = vld [vmem:[#allocation6 + $0x58] sm:$0xff]  ;;  %v2574_v16 = vld [vmem:[#allocation6 + $0x40] sm:$0xff] }
 0x37d   :  { %1995 = vtanh.f32 %v822_v13  ;;  %v830_v22 = vadd.f32 1.0, %v1992_v18  ;;  %v2566_v13 = vld [vmem:[#allocation6 + $0x48] sm:$0xff] }
 0x37e   :  { %1997 = vrcp.f32 %v819_v17  ;;  %v2576_v17 = vld [vmem:[#allocation6 + $0x50] sm:$0xff]  ;;  %v2578_v18 = vld [vmem:[#allocation6 + $0x68] sm:$0xff] }
 0x37f   :  { %1999 = vrcp.f32 %v830_v22  ;;  %v2590_v22 = vld [vmem:[#allocation6 + $0x88] sm:$0xff] }
 0x386   :  { %v1994_v20 = vpop.eup %1993 }
 0x387   :  { %v1996_v9 = vpop.eup %1995 }
 0x388   :  { %v1998_v21 = vpop.eup %1997  ;;  %v834_v23 = vmul.f32 %v1996_v9, %v1994_v20  ;;  %v2580_v20 = vld [vmem:[#allocation6 + $0x78] sm:$0xff]  ;;  %v2586_v9 = vld [vmem:[#allocation6 + $0x60] sm:$0xff] }
 0x389   :  { %v833_v8 = vmul.f32 %v1998_v21, %v2459_v19  ;;  %v2000_v25 = vpop.eup %1999  ;;  %v2588_v21 = vld [vmem:[#allocation6 + $0x70] sm:$0xff] }
 0x38b   :  { %v2500_v24 = vadd.f32 %v834_v23, %v833_v8  ;;  %v2592_v8 = vld [vmem:[#allocation6 + $0x98] sm:$0xff]  ;;  %v2598_v23 = vld [vmem:[#allocation6 + $0x80] sm:$0xff] }
 0x38d   :  { %2001 = vtanh.f32 %v2500_v24 }
 0x397   :  { %v2002_v26 = vpop.eup %2001 }
 0x398   :  { %v837_v27 = vmul.f32 %v2002_v26, %v2000_v25  ;;  %v2602_v25 = vld [vmem:[#allocation6 + $0xa8] sm:$0xff]  ;;  %v2604_v26 = vld [vmem:[#allocation6 + $0xb8] sm:$0xff] }
 0x39a   :  { %839 = vst [vmem:[#allocation11 + $0x2] sm:$0x1] %v837_v27  ;;  %v848_v28 = vpack.c.bf16 %v837_v27, %v837_v27  ;;  %v2610_v27 = vld [vmem:[#allocation6 + $0xa0] sm:$0xff] }
 0x39c   :  { %923 = vmatmul.mubr.bf16.vlgmr.msra.gmra.mrb[16].mxu0 %v848_v28  ;;  %964 = vmatmul.mubr.bf16.vlgmr.msra.gmra.mrb[16].mxu1 %v848_v28  ;;  %v2612_v28 = vld [vmem:[#allocation6 + $0xb0] sm:$0xff] }
 0x39d   :  { %1086 = vmatpush1.bf16.msra.mxu0 %v2282_v40  ;;  %1127 = vmatpush1.bf16.msra.mxu1 %v2284_v41 }
 0x39e   :  { %1087 = vmatprep.subr.bf16.mxu0 %v2286_v42  ;;  %1128 = vmatprep.subr.bf16.mxu1 %v2288_v43 }
 0x39f   :  { %1117 = vmatprep.mubr.bf16.mxu0 %v2194_v14  ;;  %1158 = vmatprep.mubr.bf16.mxu1 %v2194_v14 }
 0x3a1   :  { %1088 = vmatpush1.bf16.msra.mxu0 %v2294_v44  ;;  %1129 = vmatpush1.bf16.msra.mxu1 %v2296_v45 }
 0x3a2   :  { %1089 = vmatprep.subr.bf16.mxu0 %v2298_v46  ;;  %1130 = vmatprep.subr.bf16.mxu1 %v2300_v47 }
 0x3a5   :  { %1090 = vmatpush1.bf16.msra.mxu0 %v2308_v48  ;;  %1131 = vmatpush1.bf16.msra.mxu1 %v2310_v49 }
 0x3a6   :  { %1091 = vmatprep.subr.bf16.mxu0 %v2312_v50  ;;  %1132 = vmatprep.subr.bf16.mxu1 %v2314_v51 }
 0x3a9   :  { %1092 = vmatpush1.bf16.msra.mxu0 %v2320_v52  ;;  %1133 = vmatpush1.bf16.msra.mxu1 %v2322_v53 }
 0x3aa   :  { %1093 = vmatprep.subr.bf16.mxu0 %v2324_v54  ;;  %1134 = vmatprep.subr.bf16.mxu1 %v2326_v55  ;;  %v857_v54 = vld [vmem:[#allocation2 + $0x3] ss:$8 sm:$0xf] }
 0x3ad   :  { %1094 = vmatpush1.bf16.msra.mxu0 %v2332_v56  ;;  %1135 = vmatpush1.bf16.msra.mxu1 %v2334_v57 }
 0x3ae   :  { %1095 = vmatprep.subr.bf16.mxu0 %v2336_v58  ;;  %1136 = vmatprep.subr.bf16.mxu1 %v2338_v59 }
 0x3b1   :  { %1096 = vmatpush1.bf16.msra.mxu0 %v2344_v60  ;;  %1137 = vmatpush1.bf16.msra.mxu1 %v2346_v61 }
 0x3b2   :  { %1097 = vmatprep.subr.bf16.mxu0 %v2348_v62  ;;  %1138 = vmatprep.subr.bf16.mxu1 %v2350_v63 }
 0x3b5   :  { %1098 = vmatpush1.bf16.msra.mxu0 %v2356_v0  ;;  %1139 = vmatpush1.bf16.msra.mxu1 %v2358_v1 }
 0x3b6   :  { %1099 = vmatprep.subr.bf16.mxu0 %v2360_v2  ;;  %1140 = vmatprep.subr.bf16.mxu1 %v2362_v3 }
 0x3b9   :  { %1100 = vmatpush1.bf16.msra.mxu0 %v2368_v5  ;;  %1141 = vmatpush1.bf16.msra.mxu1 %v2370_v6 }
 0x3ba   :  { %1280 = vmatprep.subr.bf16.mxu0 %v2544_v37  ;;  %1321 = vmatprep.subr.bf16.mxu1 %v2546_v39 }
 0x46f   :  { %v924_v40 = vpop.f32.mrb[16].mxu0  ;;  %v965_v41 = vpop.f32.mrb[16].mxu1 }
 0x470   :  { %v926_v42 = vpop.f32.mrb[17].mxu0  ;;  %v967_v43 = vpop.f32.mrb[17].mxu1 }
 0x471   :  { %v976_v44 = vcombine.low %v924_v40, %v926_v42  ;;  %v977_v45 = vcombine.low %v965_v41, %v967_v43  ;;  %v928_v46 = vpop.f32.mrb[18].mxu0  ;;  %v969_v47 = vpop.f32.mrb[18].mxu1  ;;  %v2614_v40 = vld [vmem:[#allocation6 + $0xc8] sm:$0xff]  ;;  %v2616_v41 = vld [vmem:[#allocation6 + $0xd8] sm:$0xff]  ;;  %v2622_v42 = vld [vmem:[#allocation6 + $0xc0] sm:$0xff] }
 0x472   :  { %v929_v48 = vpop.f32.mrb[19].mxu0  ;;  %v970_v49 = vpop.f32.mrb[19].mxu1  ;;  %v2624_v43 = vld [vmem:[#allocation6 + $0xd0] sm:$0xff]  ;;  %v2634_v46 = vld [vmem:[#allocation6 + $0xe0] sm:$0xff] }
 0x473   :  { %v984_v50 = vrot.slane %v976_v44, %v2413_v35  ;;  %v991_v51 = vrot.slane %v977_v45, %v2413_v35  ;;  %v2626_v44 = vld [vmem:[#allocation6 + $0xe8] sm:$0xff]  ;;  %v2628_v45 = vld [vmem:[#allocation6 + $0xf8] sm:$0xff]  ;;  %v2636_v47 = vld [vmem:[#allocation6 + $0xf0] sm:$0xff] }
 0x475   :  { %v992_v52 = vcombine.low %v984_v50, %v991_v51 }
 0x477   :  { %v999_v53 = vrot.slane %v992_v52, %v2413_v35 }
 0x479   :  { %v1001_v55 = vadd.f32 %v999_v53, %v857_v54 }
 0x47b   :  { %v1920_v56 = vmul.f32 -1.442695, %v1001_v55  ;;  %v1009_v57 = vrot.slane %v1001_v55, 1  ;;  %v1020_v59 = vrot.slane %v1001_v55, 3  ;;  %v1017_v62 = vrot.slane %v1001_v55, 2 }
 0x47d   :  { %2003 = vpow2.f32 %v1920_v56  ;;  %v1921_v58 = vmul.f32 -1.442695, %v1009_v57  ;;  %v1922_v60 = vmul.f32 -1.442695, %v1020_v59 }
 0x47f   :  { %2005 = vpow2.f32 %v1921_v58 }
 0x480   :  { %2007 = vpow2.f32 %v1922_v60 }
 0x487   :  { %v2004_v61 = vpop.eup %2003 }
 0x488   :  { %v1005_v63 = vadd.f32 1.0, %v2004_v61 }
 0x489   :  { %v2006_v0 = vpop.eup %2005 }
 0x48a   :  { %2009 = vrcp.f32 %v1005_v63  ;;  %v1014_v1 = vadd.f32 1.0, %v2006_v0  ;;  %v2008_v2 = vpop.eup %2007 }
 0x48b   :  { %2011 = vtanh.f32 %v1017_v62  ;;  %v1025_v19 = vadd.f32 1.0, %v2008_v2  ;;  %v1052_v62 = vld [vmem:[#allocation2 + $0x4] ss:$8 sm:$0xf] }
 0x48c   :  { %2013 = vrcp.f32 %v1014_v1 }
 0x48d   :  { %2015 = vrcp.f32 %v1025_v19 }
 0x494   :  { %v2010_v3 = vpop.eup %2009 }
 0x495   :  { %v2012_v5 = vpop.eup %2011 }
 0x496   :  { %v2014_v6 = vpop.eup %2013  ;;  %v1029_v30 = vmul.f32 %v2012_v5, %v2010_v3 }
 0x497   :  { %v1028_v29 = vmul.f32 %v2014_v6, %v2500_v24  ;;  %v2016_v32 = vpop.eup %2015  ;;  %v2600_v24 = vld [vmem:[#allocation6 + $0x90] sm:$0xff] }
 0x499   :  { %v2539_v31 = vadd.f32 %v1029_v30, %v1028_v29 }
 0x49b   :  { %2017 = vtanh.f32 %v2539_v31 }
 0x4a5   :  { %v2018_v33 = vpop.eup %2017 }
 0x4a6   :  { %v1032_v34 = vmul.f32 %v2018_v33, %v2016_v32 }
 0x4a8   :  { %1034 = vst [vmem:[#allocation11 + $0x3] sm:$0x1] %v1032_v34  ;;  %v1043_v36 = vpack.c.bf16 %v1032_v34, %v1032_v34 }
 0x4aa   :  { %1118 = vmatmul.mubr.bf16.vlgmr.msra.gmra.mrb[20].mxu0 %v1043_v36  ;;  %1159 = vmatmul.mubr.bf16.vlgmr.msra.gmra.mrb[20].mxu1 %v1043_v36 }
 0x4ab   :  { %1312 = vmatprep.mubr.bf16.mxu0 %v2194_v14  ;;  %1353 = vmatprep.mubr.bf16.mxu1 %v2194_v14 }
 0x4ac   :  { %1281 = vmatpush1.bf16.msra.mxu0 %v2550_v38  ;;  %1322 = vmatpush1.bf16.msra.mxu1 %v2552_v4 }
 0x4ad   :  { %1282 = vmatprep.subr.bf16.mxu0 %v2554_v7  ;;  %1323 = vmatprep.subr.bf16.mxu1 %v2558_v10 }
 0x4b0   :  { %1283 = vmatpush1.bf16.msra.mxu0 %v2562_v11  ;;  %1324 = vmatpush1.bf16.msra.mxu1 %v2564_v12 }
 0x4b1   :  { %1284 = vmatprep.subr.bf16.mxu0 %v2566_v13  ;;  %1325 = vmatprep.subr.bf16.mxu1 %v2568_v15 }
 0x4b4   :  { %1285 = vmatpush1.bf16.msra.mxu0 %v2574_v16  ;;  %1326 = vmatpush1.bf16.msra.mxu1 %v2576_v17 }
 0x4b5   :  { %1286 = vmatprep.subr.bf16.mxu0 %v2578_v18  ;;  %1327 = vmatprep.subr.bf16.mxu1 %v2580_v20 }
 0x4b8   :  { %1287 = vmatpush1.bf16.msra.mxu0 %v2586_v9  ;;  %1328 = vmatpush1.bf16.msra.mxu1 %v2588_v21 }
 0x4b9   :  { %1288 = vmatprep.subr.bf16.mxu0 %v2590_v22  ;;  %1329 = vmatprep.subr.bf16.mxu1 %v2592_v8 }
 0x4bc   :  { %1289 = vmatpush1.bf16.msra.mxu0 %v2598_v23  ;;  %1330 = vmatpush1.bf16.msra.mxu1 %v2600_v24 }
 0x4bd   :  { %1290 = vmatprep.subr.bf16.mxu0 %v2602_v25  ;;  %1331 = vmatprep.subr.bf16.mxu1 %v2604_v26 }
 0x4c0   :  { %1291 = vmatpush1.bf16.msra.mxu0 %v2610_v27  ;;  %1332 = vmatpush1.bf16.msra.mxu1 %v2612_v28 }
 0x4c1   :  { %1292 = vmatprep.subr.bf16.mxu0 %v2614_v40  ;;  %1333 = vmatprep.subr.bf16.mxu1 %v2616_v41 }
 0x4c4   :  { %1293 = vmatpush1.bf16.msra.mxu0 %v2622_v42  ;;  %1334 = vmatpush1.bf16.msra.mxu1 %v2624_v43 }
 0x4c5   :  { %1294 = vmatprep.subr.bf16.mxu0 %v2626_v44  ;;  %1335 = vmatprep.subr.bf16.mxu1 %v2628_v45 }
 0x4c8   :  { %1295 = vmatpush1.bf16.msra.mxu0 %v2634_v46  ;;  %1336 = vmatpush1.bf16.msra.mxu1 %v2636_v47 }
 0x4c9   :  { %1475 = vmatprep.subr.bf16.mxu0 %v2544_v37  ;;  %1516 = vmatprep.subr.bf16.mxu1 %v2546_v39 }
 0x57d   :  { %v1119_v48 = vpop.f32.mrb[20].mxu0  ;;  %v1160_v49 = vpop.f32.mrb[20].mxu1 }
 0x57e   :  { %v1121_v50 = vpop.f32.mrb[21].mxu0  ;;  %v1162_v51 = vpop.f32.mrb[21].mxu1 }
 0x57f   :  { %v1171_v52 = vcombine.low %v1119_v48, %v1121_v50  ;;  %v1172_v53 = vcombine.low %v1160_v49, %v1162_v51  ;;  %v1123_v54 = vpop.f32.mrb[22].mxu0  ;;  %v1164_v55 = vpop.f32.mrb[22].mxu1 }
 0x580   :  { %v1124_v56 = vpop.f32.mrb[23].mxu0  ;;  %v1165_v57 = vpop.f32.mrb[23].mxu1 }
 0x581   :  { %v1179_v58 = vrot.slane %v1171_v52, %v2413_v35  ;;  %v1186_v59 = vrot.slane %v1172_v53, %v2413_v35 }
 0x583   :  { %v1187_v60 = vcombine.low %v1179_v58, %v1186_v59 }
 0x585   :  { %v1194_v61 = vrot.slane %v1187_v60, %v2413_v35 }
 0x587   :  { %v1196_v63 = vadd.f32 %v1194_v61, %v1052_v62 }
 0x589   :  { %v1923_v0 = vmul.f32 -1.442695, %v1196_v63  ;;  %v1204_v1 = vrot.slane %v1196_v63, 1  ;;  %v1215_v3 = vrot.slane %v1196_v63, 3  ;;  %v1212_v19 = vrot.slane %v1196_v63, 2 }
 0x58b   :  { %2019 = vpow2.f32 %v1923_v0  ;;  %v1924_v2 = vmul.f32 -1.442695, %v1204_v1  ;;  %v1925_v5 = vmul.f32 -1.442695, %v1215_v3 }
 0x58d   :  { %2021 = vpow2.f32 %v1924_v2 }
 0x58e   :  { %2023 = vpow2.f32 %v1925_v5 }
 0x595   :  { %v2020_v6 = vpop.eup %2019 }
 0x596   :  { %v1200_v29 = vadd.f32 1.0, %v2020_v6 }
 0x597   :  { %v2022_v30 = vpop.eup %2021 }
 0x598   :  { %2025 = vrcp.f32 %v1200_v29  ;;  %v1209_v32 = vadd.f32 1.0, %v2022_v30  ;;  %v2024_v33 = vpop.eup %2023 }
 0x599   :  { %2027 = vtanh.f32 %v1212_v19  ;;  %v1220_v49 = vadd.f32 1.0, %v2024_v33 }
 0x59a   :  { %2029 = vrcp.f32 %v1209_v32 }
 0x59b   :  { %2031 = vrcp.f32 %v1220_v49 }
 0x5a2   :  { %v2026_v34 = vpop.eup %2025 }
 0x5a3   :  { %v2028_v36 = vpop.eup %2027 }
 0x5a4   :  { %v2030_v48 = vpop.eup %2029  ;;  %v1224_v51 = vmul.f32 %v2028_v36, %v2026_v34 }
 0x5a5   :  { %v1223_v50 = vmul.f32 %v2030_v48, %v2539_v31  ;;  %v2032_v53 = vpop.eup %2031 }
 0x5a7   :  { %v2646_v52 = vadd.f32 %v1224_v51, %v1223_v50 }
 0x5a9   :  { %2033 = vtanh.f32 %v2646_v52 }
 0x5b3   :  { %v2034_v54 = vpop.eup %2033 }
 0x5b4   :  { %v1227_v55 = vmul.f32 %v2034_v54, %v2032_v53 }
 0x5b6   :  { %1229 = vst [vmem:[#allocation11 + $0x4] sm:$0x1] %v1227_v55  ;;  %v1238_v56 = vpack.c.bf16 %v1227_v55, %v1227_v55 }
 0x5b8   :  { %1313 = vmatmul.mubr.bf16.vlgmr.msra.gmra.mrb[24].mxu0 %v1238_v56  ;;  %1354 = vmatmul.mubr.bf16.vlgmr.msra.gmra.mrb[24].mxu1 %v1238_v56 }
 0x5b9   :  { %1476 = vmatpush1.bf16.msra.mxu0 %v2550_v38  ;;  %1517 = vmatpush1.bf16.msra.mxu1 %v2552_v4 }
 0x5ba   :  { %1477 = vmatprep.subr.bf16.mxu0 %v2554_v7  ;;  %1518 = vmatprep.subr.bf16.mxu1 %v2558_v10 }
 0x5bb   :  { %1507 = vmatprep.mubr.bf16.mxu0 %v2194_v14  ;;  %1548 = vmatprep.mubr.bf16.mxu1 %v2194_v14 }
 0x5bd   :  { %1478 = vmatpush1.bf16.msra.mxu0 %v2562_v11  ;;  %1519 = vmatpush1.bf16.msra.mxu1 %v2564_v12 }
 0x5be   :  { %1479 = vmatprep.subr.bf16.mxu0 %v2566_v13  ;;  %1520 = vmatprep.subr.bf16.mxu1 %v2568_v15 }
 0x5c1   :  { %1480 = vmatpush1.bf16.msra.mxu0 %v2574_v16  ;;  %1521 = vmatpush1.bf16.msra.mxu1 %v2576_v17 }
 0x5c2   :  { %1481 = vmatprep.subr.bf16.mxu0 %v2578_v18  ;;  %1522 = vmatprep.subr.bf16.mxu1 %v2580_v20 }
 0x5c5   :  { %1482 = vmatpush1.bf16.msra.mxu0 %v2586_v9  ;;  %1523 = vmatpush1.bf16.msra.mxu1 %v2588_v21 }
 0x5c6   :  { %1483 = vmatprep.subr.bf16.mxu0 %v2590_v22  ;;  %1524 = vmatprep.subr.bf16.mxu1 %v2592_v8 }
 0x5c9   :  { %1484 = vmatpush1.bf16.msra.mxu0 %v2598_v23  ;;  %1525 = vmatpush1.bf16.msra.mxu1 %v2600_v24 }
 0x5ca   :  { %1485 = vmatprep.subr.bf16.mxu0 %v2602_v25  ;;  %1526 = vmatprep.subr.bf16.mxu1 %v2604_v26 }
 0x5cd   :  { %1486 = vmatpush1.bf16.msra.mxu0 %v2610_v27  ;;  %1527 = vmatpush1.bf16.msra.mxu1 %v2612_v28 }
 0x5ce   :  { %1487 = vmatprep.subr.bf16.mxu0 %v2614_v40  ;;  %1528 = vmatprep.subr.bf16.mxu1 %v2616_v41 }
 0x5d1   :  { %1488 = vmatpush1.bf16.msra.mxu0 %v2622_v42  ;;  %1529 = vmatpush1.bf16.msra.mxu1 %v2624_v43 }
 0x5d2   :  { %1489 = vmatprep.subr.bf16.mxu0 %v2626_v44  ;;  %1530 = vmatprep.subr.bf16.mxu1 %v2628_v45 }
 0x5d5   :  { %1490 = vmatpush1.bf16.msra.mxu0 %v2634_v46  ;;  %1531 = vmatpush1.bf16.msra.mxu1 %v2636_v47 }
 0x5d6   :  { %1670 = vmatprep.subr.bf16.mxu0 %v2544_v37  ;;  %1711 = vmatprep.subr.bf16.mxu1 %v2546_v39  ;;  %v1247_v37 = vld [vmem:[#allocation2 + $0x5] ss:$8 sm:$0xf] }
 0x68b   :  { %v1314_v31 = vpop.f32.mrb[24].mxu0  ;;  %v1355_v57 = vpop.f32.mrb[24].mxu1 }
 0x68c   :  { %v1316_v58 = vpop.f32.mrb[25].mxu0  ;;  %v1357_v59 = vpop.f32.mrb[25].mxu1 }
 0x68d   :  { %v1366_v60 = vcombine.low %v1314_v31, %v1316_v58  ;;  %v1367_v61 = vcombine.low %v1355_v57, %v1357_v59  ;;  %v1318_v62 = vpop.f32.mrb[26].mxu0  ;;  %v1359_v63 = vpop.f32.mrb[26].mxu1 }
 0x68e   :  { %v1319_v0 = vpop.f32.mrb[27].mxu0  ;;  %v1360_v1 = vpop.f32.mrb[27].mxu1 }
 0x68f   :  { %v1374_v2 = vrot.slane %v1366_v60, %v2413_v35  ;;  %v1381_v3 = vrot.slane %v1367_v61, %v2413_v35 }
 0x691   :  { %v1382_v5 = vcombine.low %v1374_v2, %v1381_v3 }
 0x693   :  { %v1389_v6 = vrot.slane %v1382_v5, %v2413_v35 }
 0x695   :  { %v1391_v19 = vadd.f32 %v1389_v6, %v1247_v37 }
 0x697   :  { %v1926_v39 = vmul.f32 -1.442695, %v1391_v19  ;;  %v1399_v29 = vrot.slane %v1391_v19, 1  ;;  %v1410_v32 = vrot.slane %v1391_v19, 3  ;;  %v1407_v36 = vrot.slane %v1391_v19, 2 }
 0x699   :  { %2035 = vpow2.f32 %v1926_v39  ;;  %v1927_v30 = vmul.f32 -1.442695, %v1399_v29  ;;  %v1928_v33 = vmul.f32 -1.442695, %v1410_v32 }
 0x69b   :  { %2037 = vpow2.f32 %v1927_v30 }
 0x69c   :  { %2039 = vpow2.f32 %v1928_v33 }
 0x6a3   :  { %v2036_v34 = vpop.eup %2035 }
 0x6a4   :  { %v1395_v48 = vadd.f32 1.0, %v2036_v34 }
 0x6a5   :  { %v2038_v49 = vpop.eup %2037 }
 0x6a6   :  { %2041 = vrcp.f32 %v1395_v48  ;;  %v1404_v50 = vadd.f32 1.0, %v2038_v49  ;;  %v2040_v51 = vpop.eup %2039 }
 0x6a7   :  { %2043 = vtanh.f32 %v1407_v36  ;;  %v1415_v56 = vadd.f32 1.0, %v2040_v51 }
 0x6a8   :  { %2045 = vrcp.f32 %v1404_v50 }
 0x6a9   :  { %2047 = vrcp.f32 %v1415_v56 }
 0x6b0   :  { %v2042_v53 = vpop.eup %2041 }
 0x6b1   :  { %v2044_v54 = vpop.eup %2043 }
 0x6b2   :  { %v2046_v55 = vpop.eup %2045  ;;  %v1419_v57 = vmul.f32 %v2044_v54, %v2042_v53  ;;  %v1637_v53 = vld [vmem:[#allocation2 + $0x7] ss:$8 sm:$0xf] }
 0x6b3   :  { %v1418_v31 = vmul.f32 %v2046_v55, %v2646_v52  ;;  %v2048_v59 = vpop.eup %2047 }
 0x6b5   :  { %v2687_v58 = vadd.f32 %v1419_v57, %v1418_v31 }
 0x6b7   :  { %2049 = vtanh.f32 %v2687_v58 }
 0x6c1   :  { %v2050_v60 = vpop.eup %2049 }
 0x6c2   :  { %v1422_v61 = vmul.f32 %v2050_v60, %v2048_v59 }
 0x6c4   :  { %1424 = vst [vmem:[#allocation11 + $0x5] sm:$0x1] %v1422_v61  ;;  %v1433_v62 = vpack.c.bf16 %v1422_v61, %v1422_v61 }
 0x6c6   :  { %1508 = vmatmul.mubr.bf16.vlgmr.msra.gmra.mrb[28].mxu0 %v1433_v62  ;;  %1549 = vmatmul.mubr.bf16.vlgmr.msra.gmra.mrb[28].mxu1 %v1433_v62 }
 0x6c7   :  { %1671 = vmatpush1.bf16.msra.mxu0 %v2550_v38  ;;  %1712 = vmatpush1.bf16.msra.mxu1 %v2552_v4 }
 0x6c8   :  { %1672 = vmatprep.subr.bf16.mxu0 %v2554_v7  ;;  %1713 = vmatprep.subr.bf16.mxu1 %v2558_v10 }
 0x6c9   :  { %1702 = vmatprep.mubr.bf16.mxu0 %v2194_v14  ;;  %1743 = vmatprep.mubr.bf16.mxu1 %v2194_v14 }
 0x6cb   :  { %1673 = vmatpush1.bf16.msra.mxu0 %v2562_v11  ;;  %1714 = vmatpush1.bf16.msra.mxu1 %v2564_v12 }
 0x6cc   :  { %1674 = vmatprep.subr.bf16.mxu0 %v2566_v13  ;;  %1715 = vmatprep.subr.bf16.mxu1 %v2568_v15 }
 0x6cf   :  { %1675 = vmatpush1.bf16.msra.mxu0 %v2574_v16  ;;  %1716 = vmatpush1.bf16.msra.mxu1 %v2576_v17 }
 0x6d0   :  { %1676 = vmatprep.subr.bf16.mxu0 %v2578_v18  ;;  %1717 = vmatprep.subr.bf16.mxu1 %v2580_v20 }
 0x6d3   :  { %1677 = vmatpush1.bf16.msra.mxu0 %v2586_v9  ;;  %1718 = vmatpush1.bf16.msra.mxu1 %v2588_v21  ;;  %v1442_v21 = vld [vmem:[#allocation2 + $0x6] ss:$8 sm:$0xf] }
 0x6d4   :  { %1678 = vmatprep.subr.bf16.mxu0 %v2590_v22  ;;  %1719 = vmatprep.subr.bf16.mxu1 %v2592_v8 }
 0x6d7   :  { %1679 = vmatpush1.bf16.msra.mxu0 %v2598_v23  ;;  %1720 = vmatpush1.bf16.msra.mxu1 %v2600_v24 }
 0x6d8   :  { %1680 = vmatprep.subr.bf16.mxu0 %v2602_v25  ;;  %1721 = vmatprep.subr.bf16.mxu1 %v2604_v26 }
 0x6db   :  { %1681 = vmatpush1.bf16.msra.mxu0 %v2610_v27  ;;  %1722 = vmatpush1.bf16.msra.mxu1 %v2612_v28 }
 0x6dc   :  { %1682 = vmatprep.subr.bf16.mxu0 %v2614_v40  ;;  %1723 = vmatprep.subr.bf16.mxu1 %v2616_v41 }
 0x6df   :  { %1683 = vmatpush1.bf16.msra.mxu0 %v2622_v42  ;;  %1724 = vmatpush1.bf16.msra.mxu1 %v2624_v43 }
 0x6e0   :  { %1684 = vmatprep.subr.bf16.mxu0 %v2626_v44  ;;  %1725 = vmatprep.subr.bf16.mxu1 %v2628_v45 }
 0x6e3   :  { %1685 = vmatpush1.bf16.msra.mxu0 %v2634_v46  ;;  %1726 = vmatpush1.bf16.msra.mxu1 %v2636_v47 }
 0x799   :  { %v1509_v14 = vpop.f32.mrb[28].mxu0  ;;  %v1550_v38 = vpop.f32.mrb[28].mxu1 }
 0x79a   :  { %v1511_v4 = vpop.f32.mrb[29].mxu0  ;;  %v1552_v7 = vpop.f32.mrb[29].mxu1 }
 0x79b   :  { %v1561_v10 = vcombine.low %v1509_v14, %v1511_v4  ;;  %v1562_v11 = vcombine.low %v1550_v38, %v1552_v7  ;;  %v1513_v12 = vpop.f32.mrb[30].mxu0  ;;  %v1554_v13 = vpop.f32.mrb[30].mxu1 }
 0x79c   :  { %v1514_v15 = vpop.f32.mrb[31].mxu0  ;;  %v1555_v16 = vpop.f32.mrb[31].mxu1 }
 0x79d   :  { %v1569_v17 = vrot.slane %v1561_v10, %v2413_v35  ;;  %v1576_v18 = vrot.slane %v1562_v11, %v2413_v35 }
 0x79f   :  { %v1577_v20 = vcombine.low %v1569_v17, %v1576_v18 }
 0x7a1   :  { %v1584_v9 = vrot.slane %v1577_v20, %v2413_v35 }
 0x7a3   :  { %v1586_v22 = vadd.f32 %v1584_v9, %v1442_v21 }
 0x7a5   :  { %v1929_v8 = vmul.f32 -1.442695, %v1586_v22  ;;  %v1594_v23 = vrot.slane %v1586_v22, 1  ;;  %v1605_v25 = vrot.slane %v1586_v22, 3  ;;  %v1602_v28 = vrot.slane %v1586_v22, 2 }
 0x7a7   :  { %2051 = vpow2.f32 %v1929_v8  ;;  %v1930_v24 = vmul.f32 -1.442695, %v1594_v23  ;;  %v1931_v26 = vmul.f32 -1.442695, %v1605_v25 }
 0x7a9   :  { %2053 = vpow2.f32 %v1930_v24 }
 0x7aa   :  { %2055 = vpow2.f32 %v1931_v26 }
 0x7b1   :  { %v2052_v27 = vpop.eup %2051 }
 0x7b2   :  { %v1590_v40 = vadd.f32 1.0, %v2052_v27 }
 0x7b3   :  { %v2054_v41 = vpop.eup %2053 }
 0x7b4   :  { %2057 = vrcp.f32 %v1590_v40  ;;  %v1599_v42 = vadd.f32 1.0, %v2054_v41  ;;  %v2056_v43 = vpop.eup %2055 }
 0x7b5   :  { %2059 = vtanh.f32 %v1602_v28  ;;  %v1610_v47 = vadd.f32 1.0, %v2056_v43 }
 0x7b6   :  { %2061 = vrcp.f32 %v1599_v42 }
 0x7b7   :  { %2063 = vrcp.f32 %v1610_v47 }
 0x7be   :  { %v2058_v44 = vpop.eup %2057 }
 0x7bf   :  { %v2060_v45 = vpop.eup %2059 }
 0x7c0   :  { %v2062_v46 = vpop.eup %2061  ;;  %v1614_v63 = vmul.f32 %v2060_v45, %v2058_v44 }
 0x7c1   :  { %v1613_v52 = vmul.f32 %v2062_v46, %v2687_v58  ;;  %v2064_v1 = vpop.eup %2063 }
 0x7c3   :  { %v1615_v0 = vadd.f32 %v1614_v63, %v1613_v52 }
 0x7c5   :  { %2065 = vtanh.f32 %v1615_v0 }
 0x7cf   :  { %v2066_v2 = vpop.eup %2065 }
 0x7d0   :  { %v1617_v3 = vmul.f32 %v2066_v2, %v2064_v1 }
 0x7d2   :  { %1619 = vst [vmem:[#allocation11 + $0x6] sm:$0x1] %v1617_v3  ;;  %v1628_v5 = vpack.c.bf16 %v1617_v3, %v1617_v3 }
 0x7d4   :  { %1703 = vmatmul.mubr.bf16.vlgmr.msra.gmra.mrb[32].mxu0 %v1628_v5  ;;  %1744 = vmatmul.mubr.bf16.vlgmr.msra.gmra.mrb[32].mxu1 %v1628_v5 }
 0x8a7   :  { %v1704_v6 = vpop.f32.mrb[32].mxu0  ;;  %v1745_v37 = vpop.f32.mrb[32].mxu1 }
 0x8a8   :  { %v1706_v19 = vpop.f32.mrb[33].mxu0  ;;  %v1747_v39 = vpop.f32.mrb[33].mxu1 }
 0x8a9   :  { %v1756_v29 = vcombine.low %v1704_v6, %v1706_v19  ;;  %v1757_v30 = vcombine.low %v1745_v37, %v1747_v39  ;;  %v1708_v32 = vpop.f32.mrb[34].mxu0  ;;  %v1749_v33 = vpop.f32.mrb[34].mxu1 }
 0x8aa   :  { %v1709_v34 = vpop.f32.mrb[35].mxu0  ;;  %v1750_v36 = vpop.f32.mrb[35].mxu1 }
 0x8ab   :  { %v1764_v48 = vrot.slane %v1756_v29, %v2413_v35  ;;  %v1771_v49 = vrot.slane %v1757_v30, %v2413_v35 }
 0x8ad   :  { %v1772_v50 = vcombine.low %v1764_v48, %v1771_v49 }
 0x8af   :  { %v1779_v51 = vrot.slane %v1772_v50, %v2413_v35 }
 0x8b1   :  { %v1781_v54 = vadd.f32 %v1779_v51, %v1637_v53 }
 0x8b3   :  { %v1932_v55 = vmul.f32 -1.442695, %v1781_v54  ;;  %v1789_v56 = vrot.slane %v1781_v54, 1  ;;  %v1800_v57 = vrot.slane %v1781_v54, 3  ;;  %v1797_v60 = vrot.slane %v1781_v54, 2 }
 0x8b5   :  { %2067 = vpow2.f32 %v1932_v55  ;;  %v1933_v31 = vmul.f32 -1.442695, %v1789_v56  ;;  %v1934_v58 = vmul.f32 -1.442695, %v1800_v57 }
 0x8b7   :  { %2069 = vpow2.f32 %v1933_v31 }
 0x8b8   :  { %2071 = vpow2.f32 %v1934_v58 }
 0x8bf   :  { %v2068_v59 = vpop.eup %2067 }
 0x8c0   :  { %v1785_v61 = vadd.f32 1.0, %v2068_v59 }
 0x8c1   :  { %v2070_v62 = vpop.eup %2069 }
 0x8c2   :  { %2073 = vrcp.f32 %v1785_v61  ;;  %v1794_v14 = vadd.f32 1.0, %v2070_v62  ;;  %v2072_v38 = vpop.eup %2071 }
 0x8c3   :  { %2075 = vtanh.f32 %v1797_v60  ;;  %v1805_v10 = vadd.f32 1.0, %v2072_v38 }
 0x8c4   :  { %2077 = vrcp.f32 %v1794_v14 }
 0x8c5   :  { %2079 = vrcp.f32 %v1805_v10 }
 0x8cc   :  { %v2074_v35 = vpop.eup %2073 }
 0x8cd   :  { %v2076_v4 = vpop.eup %2075 }
 0x8ce   :  { %v2078_v7 = vpop.eup %2077  ;;  %v1809_v12 = vmul.f32 %v2076_v4, %v2074_v35 }
 0x8cf   :  { %v1808_v11 = vmul.f32 %v2078_v7, %v1615_v0  ;;  %v2080_v15 = vpop.eup %2079 }
 0x8d1   :  { %v1810_v13 = vadd.f32 %v1809_v12, %v1808_v11 }
 0x8d3   :  { %2081 = vtanh.f32 %v1810_v13  ;;  %1823 = vst [vmem:[#allocation4] sm:$0x1] %v1810_v13  ;;  %1821 = vst [vmem:[#allocation14] sm:$0x1] %v1810_v13 }
 0x8dd   :  { %v2082_v16 = vpop.eup %2081 }
 0x8de   :  { %v1812_v17 = vmul.f32 %v2082_v16, %v2080_v15 }
 0x8e0   :  { %1814 = vst [vmem:[#allocation11 + $0x7] sm:$0x1] %v1812_v17  ;;  %1820 = vst [vmem:[#allocation12] sm:$0x1] %v1812_v17 }
 0x8e1   :  { %1822 = vst [vmem:[#allocation3] sm:$0x1] %v1812_v17 }
 0x8e2   :  { %2116 = shalt.err (!%p2113_p12)
}
 0x8e3   :  { %s2117_s29 = scalar_lea.hbm %s2787_s7, 16 }
 0x8e4   :  { %p2118_p13 = scmp.ne.s32.totalorder %s2787_s7, %s2117_s29  ;;  %p2121_p0 = scmp.lt.u32.totalorder %s2117_s29, %s2787_s7 }
 0x8e6   :  { %p2123_p1 = pnand %p2121_p0, %p2118_p13 }
 0x8e8   :  { %2126 = shalt.err (!%p2123_p1)
}
 0x8e9   :  { %1843 = dma.vmem_to_hbm [thread:$0]  %s1841_s21, 16, %s2787_s7, [#allocation13]  }
 0x8ea   :  { %s2127_s14 = scalar_lea.vmem %s2729_s23, 128  ;;  %p2132_p3 = scmp.lt.s32.totalorder %s2729_s23, %s2729_s23 }
 0x8eb   :  { %p2128_p2 = scmp.ne.s32.totalorder %s2729_s23, %s2127_s14  ;;  %p2133_p4 = scmp.lt.s32.totalorder %s2127_s14, %s2127_s14 }
 0x8ed   :  { %p2134_p5 = por %p2133_p4, %p2132_p3 }
 0x8ef   :  { %p2135_p6 = pnand %p2134_p5, %p2128_p2 }
 0x8f1   :  { %2138 = shalt.err (!%p2135_p6)
}
 0x8f2   :  { %s2139_s16 = scalar_lea.hbm %s2786_s6, 128 }
 0x8f3   :  { %p2140_p7 = scmp.ne.s32.totalorder %s2786_s6, %s2139_s16  ;;  %p2143_p8 = scmp.lt.u32.totalorder %s2139_s16, %s2786_s6 }
 0x8f5   :  { %p2145_p9 = pnand %p2143_p8, %p2140_p7 }
 0x8f7   :  { %2148 = shalt.err (!%p2145_p9)
}
 0x8f8   :  { %1833 = dma.vmem_to_hbm [thread:$0]  %s2729_s23, 128, %s2786_s6, [#allocation10]  }
 0x8f9   :  { %s2149_s4 = scalar_lea.vmem %s2731_s25, 16  ;;  %s2153_s5 = scalar_lea.vmem %s2731_s25, 32 }
 0x8fa   :  { %p2150_p10 = scmp.ne.s32.totalorder %s2731_s25, %s2149_s4  ;;  %p2154_p11 = scmp.lt.s32.totalorder %s2731_s25, %s2731_s25 }
 0x8fb   :  { %p2155_p12 = scmp.lt.s32.totalorder %s2153_s5, %s2149_s4 }
 0x8fd   :  { %p2156_p13 = por %p2155_p12, %p2154_p11 }
 0x8ff   :  { %p2157_p0 = pnand %p2156_p13, %p2150_p10 }
 0x901   :  { %2160 = shalt.err (!%p2157_p0)
}
 0x902   :  { %s2161_s22 = scalar_lea.hbm %s2788_s8, 16 }
 0x903   :  { %p2162_p1 = scmp.ne.s32.totalorder %s2788_s8, %s2161_s22  ;;  %p2165_p2 = scmp.lt.u32.totalorder %s2161_s22, %s2788_s8 }
 0x905   :  { %p2167_p3 = pnand %p2165_p2, %p2162_p1 }
 0x907   :  { %2170 = shalt.err (!%p2167_p3)
}
 0x908   :  { %1853 = dma.vmem_to_hbm [thread:$0]  %s2731_s25, 16, %s2788_s8, [#allocation13]  }
 0x909   :  { %2177 = dma.done.wait [#allocation10], 128  }
 0x90a   :  { %2178 = vsyncadd [#allocation10], 4294967168 }
 0x90b   :  { %2179 = dma.done.wait [#allocation13], 32  }
 0x90c   :  { %2180 = vsyncadd [#allocation13], 4294967264 }
 0x90d   :  { %1863 = vsyncpa [#allocation9], 1 }
 0x90e   :  { %1864 = vsyncpa [#allocation10], 1 }
 0x90f   :  { %1865 = vsyncpa [#allocation13], 1 }
 0x910   :  { %1866 = vsyncmov [#allocation7] }
 0x913   :  { %s1867_s28 = vpop.sfrf %1866 }
 0x914   :  { %p1935_p4 = scmp.ne.s32.totalorder %s1867_s28, 0 }
 0x916   :  { %1871 = shalt.err (%p1935_p4)  }
 0x917   :  { %1873 = vsyncmov [#allocation7 + $0x1] }
 0x91a   :  { %s1874_s29 = vpop.sfrf %1873 }
 0x91b   :  { %p1936_p5 = scmp.ne.s32.totalorder %s1874_s29, 0 }
 0x91d   :  { %1878 = shalt.err (%p1936_p5)  }

</bundles_post_ra>
